<compile_context>
chip_gen: v7x
topology: tpu7x:2x2x1
jax: 0.10.0
libtpu: 0.0.40
codegen_flags: <defaults>
</compile_context>

<pallas_src>
import jax
import jax.numpy as jnp
from jax.experimental import pallas as pl
from jax.experimental.pallas import tpu as pltpu


def linear_kernel(x_ref, w_ref, b_ref, o_ref):
    # x_ref: (M, K) bf16, resident across the N grid axis.
    # w_ref: (K, tn) bf16 tile of the pre-transposed weight (native MXU layout).
    # b_ref: (1, tn) f32 bias tile.  o_ref: (M, tn) f32 output tile.
    acc = jnp.dot(x_ref[...], w_ref[...], preferred_element_type=jnp.float32)
    o_ref[...] = (acc + b_ref[...]).astype(o_ref.dtype)


def pallas_linear(x2d_bf16, w_kn_bf16, bias_f32, *, tn=512):
    M, K = x2d_bf16.shape
    K2, N = w_kn_bf16.shape
    assert K == K2 and N % tn == 0 and N // tn >= 2
    bias2d = bias_f32.reshape(1, N)

    bytes_accessed = (x2d_bf16.size * x2d_bf16.dtype.itemsize
                      + w_kn_bf16.size * w_kn_bf16.dtype.itemsize
                      + bias2d.size * bias2d.dtype.itemsize
                      + M * N * 4)

    return pl.pallas_call(
        linear_kernel,
        out_shape=jax.ShapeDtypeStruct((M, N), jnp.float32),
        grid_spec=pltpu.PrefetchScalarGridSpec(
            num_scalar_prefetch=0,
            grid=(N // tn,),  # 4 steps at tn=512: >=2 per core on v7x megacore.
            in_specs=[
                pl.BlockSpec((M, K), lambda j: (0, 0)),   # x stays resident
                pl.BlockSpec((K, tn), lambda j: (0, j)),  # [K, N] weight tile
                pl.BlockSpec((1, tn), lambda j: (0, j)),  # bias tile
            ],
            out_specs=pl.BlockSpec((M, tn), lambda j: (0, j)),
        ),
        compiler_params=pltpu.CompilerParams(
            dimension_semantics=("parallel",),
            vmem_limit_bytes=12 * 1024 * 1024,
        ),
        cost_estimate=pl.CostEstimate(
            flops=2 * M * K * N,
            bytes_accessed=bytes_accessed,
            transcendentals=0),
    )(x2d_bf16, w_kn_bf16, bias2d)


def prepare_params(weight, bias):
    """One-time parameter prep (off the hot path): transpose the [N, K] weight
    to the native MXU layout [K, N] and cast to bf16; keep bias in f32."""
    w_kn_bf16 = jnp.asarray(weight.T, dtype=jnp.bfloat16)
    return w_kn_bf16, bias.astype(jnp.float32)


@jax.jit
def linear38_forward(x, w_kn_bf16, bias_f32):
    # x: [B, H, W, 512]; w_kn_bf16: [512, 2048]; bias_f32: [2048]
    B, H, W, K = x.shape
    N = w_kn_bf16.shape[1]
    # Cast x to bf16 once, outside the grid loop (halves its HBM read and
    # removes the per-step in-kernel repack).  Accumulation stays f32.
    x2d = x.reshape(B * H * W, K).astype(jnp.bfloat16)
    out2d = pallas_linear(x2d, w_kn_bf16, bias_f32)
    return out2d.reshape(B, H, W, N)


if __name__ == "__main__":
    key = jax.random.PRNGKey(0)
    kx, kw, kb = jax.random.split(key, 3)

    in_features, out_features = 512, 2048
    x = jax.random.normal(kx, (1, 14, 14, in_features), dtype=jnp.float32)

    # Deterministic parameter init (mimicking nn.Linear's uniform init bounds).
    bound = 1.0 / (in_features ** 0.5)
    weight = jax.random.uniform(
        kw, (out_features, in_features), minval=-bound, maxval=bound,
        dtype=jnp.float32)
    bias = jax.random.uniform(
        kb, (out_features,), minval=-bound, maxval=bound, dtype=jnp.float32)

    # Init-time prep: [K, N] bf16 weight (native MXU layout, no per-call work).
    w_kn_bf16, bias_f32 = prepare_params(weight, bias)

    out = linear38_forward(x, w_kn_bf16, bias_f32)
    jax.block_until_ready(out)

    # Cross-check against plain JAX f32 reference (tolerance loosened for the
    # bf16 weight/activation casts; accumulation is f32 in both paths).
    ref = jnp.einsum("bhwk,nk->bhwn", x, weight) + bias
    assert out.shape == (1, 14, 14, out_features)
    assert jnp.allclose(out, ref, atol=3e-2, rtol=3e-2), (
        float(jnp.max(jnp.abs(out - ref))))

    print("KERNEL_OK")
</pallas_src>

<mosaic_0001>
module attributes {stable_mosaic.version = 11 : i64} {
  func.func @linear_kernel(%arg0: i32, %arg1: memref<196x512xbf16, #tpu.memory_space<vmem>>, %arg2: memref<512x512xbf16, #tpu.memory_space<vmem>>, %arg3: memref<1x512xf32, #tpu.memory_space<vmem>>, %arg4: memref<196x512xf32, #tpu.memory_space<vmem>>) attributes {dimension_semantics = [#tpu.dimension_semantics<parallel>], iteration_bounds = array<i64: 4>, scalar_prefetch = 0 : i64, scratch_operands = 0 : i64, tpu.core_type = #tpu.core_type<tc>, window_params = [{pipeline_mode = #tpu.pipeline_mode<synchronous>, transform_indices = @transform_0, window_bounds = array<i64: 196, 512>}, {transform_indices = @transform_1, window_bounds = array<i64: 512, 512>}, {transform_indices = @transform_2, window_bounds = array<i64: 1, 512>}, {transform_indices = @transform_3, window_bounds = array<i64: 196, 512>}]} {
    %c0 = arith.constant 0 : index
    %c0_0 = arith.constant 0 : index
    %0 = vector.load %arg1[%c0, %c0_0] : memref<196x512xbf16, #tpu.memory_space<vmem>>, vector<196x512xbf16>
    %c0_1 = arith.constant 0 : index
    %c0_2 = arith.constant 0 : index
    %1 = vector.load %arg2[%c0_1, %c0_2] : memref<512x512xbf16, #tpu.memory_space<vmem>>, vector<512x512xbf16>
    %cst = arith.constant dense<0.000000e+00> : vector<196x512xf32>
    %2 = tpu.matmul %0, %1, %cst {dimension_numbers = #tpu.dot_dimension_numbers<[1], [0], [0], [1], [0, 0, 1, 1], [], []>} : vector<196x512xbf16>, vector<512x512xbf16>, vector<196x512xf32> -> vector<196x512xf32>
    %c0_3 = arith.constant 0 : index
    %c0_4 = arith.constant 0 : index
    %3 = vector.load %arg3[%c0_3, %c0_4] : memref<1x512xf32, #tpu.memory_space<vmem>>, vector<1x512xf32>
    %4 = vector.broadcast %3 : vector<1x512xf32> to vector<196x512xf32>
    %5 = arith.addf %2, %4 : vector<196x512xf32>
    %c0_5 = arith.constant 0 : index
    %c0_6 = arith.constant 0 : index
    %6 = vector.load %arg4[%c0_5, %c0_6] : memref<196x512xf32, #tpu.memory_space<vmem>>, vector<196x512xf32>
    tpu.vector_store %arg4[%c0_5, %c0_6], %5 {strides = array<i32>} : memref<196x512xf32, #tpu.memory_space<vmem>>, vector<196x512xf32>,
    return
  }
  func.func @transform_0(%arg0: i32) -> (i32, i32) {
    %c0_i32 = arith.constant 0 : i32
    %c0_i32_0 = arith.constant 0 : i32
    %c0_i32_1 = arith.constant 0 : i32
    return %c0_i32, %c0_i32_0 : i32, i32
  }
  func.func @transform_1(%arg0: i32) -> (i32, i32) {
    %c0_i32 = arith.constant 0 : i32
    %c0_i32_0 = arith.constant 0 : i32
    return %c0_i32, %arg0 : i32, i32
  }
  func.func @transform_2(%arg0: i32) -> (i32, i32) {
    %c0_i32 = arith.constant 0 : i32
    %c0_i32_0 = arith.constant 0 : i32
    return %c0_i32, %arg0 : i32, i32
  }
  func.func @transform_3(%arg0: i32) -> (i32, i32) {
    %c0_i32 = arith.constant 0 : i32
    %c0_i32_0 = arith.constant 0 : i32
    return %c0_i32, %arg0 : i32, i32
  }
}

</mosaic_0001>

<bundles_post_ra>
// kernel: linear38_forward.1
= control target key start
LH: loop header
LB: loop body
LE: loop exit
PB: predicated region body
PF: predicated region fallthrough
CT: control target
= control target key end

     0   :  { %8 = vsyncpa [#allocation3], 0  ;;  %s4078_s0 = inlined_call_operand.vmem [shape: bf16[196,512], index: 0, kind: input, shape index: {}]   ;;  %s4079_s1 = inlined_call_operand.hbm [shape: bf16[512,2048], index: 1, kind: input, shape index: {}]   ;;  %s4080_s2 = inlined_call_operand.hbm [shape: f32[1,2048], index: 2, kind: input, shape index: {}]   ;;  %s4081_s3 = inlined_call_operand.vmem [shape: f32[196,2048], index: 3, kind: output, shape index: {}]  }
   0x1   :  { %10 = vsyncpa [#allocation3 + $0x1], 0 }
   0x2   :  { %11 = vsyncpa [#allocation5], 0 }
   0x3   :  { %13 = vsyncpa [#allocation5 + $0x1], 0  ;;  %s3218_s12 = smov 0   ;;  %s3220_s13 = smov 0  }
   0x4   :  { %s3222_s14 = smov 0   ;;  %s3224_s15 = smov 0  }
   0x5 LB: > { %s3237_s16 = sadd.s32 4294967295, %s3191_s15   ;;  %s3240_s17 = sadd.s32 1, %s3191_s15   ;;  %s3191_s15 = sphi %s3224_s15, %s4094_s15   ;;  %s3187_s14 = sphi %s3222_s14, %s4093_s14   ;;  %s3183_s13 = sphi %s3220_s13, %s4092_s13   ;;  %s3179_s12 = sphi %s3218_s12, %s4091_s12  }
   0x6   : > { %s44_s18 = ssub.s32 %s3191_s15, %s3240_s17  ;;  %s47_s19 = sadd.s32 1, %s3187_s14 }
   0x7   : > { %p45_p0 = scmp.eq.s32.totalorder %s44_s18, 0  ;;  %p54_p1 = scmp.ne.s32.totalorder %s3187_s14, %s3183_s13 }
   0x8   : > { %p55_p2 = scmp.eq.s32.totalorder %s3191_s15, 0  ;;  %p60_p3 = scmp.ne.s32.totalorder %s3183_s13, %s3179_s12 }
   0x9   : > { %s3250_s20 = scalar_select %p45_p0, %s3187_s14, %s47_s19  }
   0xa   : > { %p3252_p4 = por %p55_p2, %p54_p1  ;;  %p61_p5 = scmp.eq.s32.totalorder %s3237_s16, 0 }
   0xb   : > { %p110_p6 = scmp.eq.s32.totalorder %s3237_s16, 3  ;;  %p2789_p8 = scmp.lt.s32.totalorder %s3191_s15, 4 }
   0xc   : > { %p3258_p7 = por %p61_p5, %p60_p3  ;;  %s3268_s24 = sand.u32 1, %s3187_s14  }
   0xd   : > { %p3263_p9 = por %p110_p6, %p54_p1  ;;  %s2377_s25 = sshll.u32 %s3268_s24, 10 }
   0xe   : > { %s4084_s22 = scalar_select %p3258_p7, 1, 0 }
   0xf   : > { %s4085_s23 = scalar_select %p3263_p9, 1, 0 }
  0x10   : > { %s2570_s26 = sshll.u32 %s3191_s15, 8  ;;  %s143_s30 = scalar_lea.vmem [#allocation2], %s2377_s25 }
  0x11   : > { %s3275_s29 = scalar_lea.hbm %s4079_s1, %s2570_s26  ;;  %s150_s4 = sshll.u32 %s143_s30, 4  ;;  %s3277_s4 = int_to_ptr.vmem [resolvable:$true] %s150_s4 }
  0x12   : > { %p3281_p10 = pnand %p2789_p8, %p3252_p4  ;;  %s140_s6 = scalar_lea.sflag [#allocation3], %s3268_s24 }
  0x13   : > { %s3093_s7 = scalar_lea.hbm %s3275_s29, 16384  ;;  %s3098_s10 = scalar_lea.hbm %s4079_s1, 65536 }
  0x14   : > { %p3094_p11 = scmp.ne.s32.totalorder %s3275_s29, %s3093_s7  ;;  %p3095_p12 = pneg %p3281_p10 }
  0x15   : > { %p3099_p1 = scmp.lt.u32.totalorder %s3275_s29, %s4079_s1  ;;  %p3100_p2 = scmp.lt.u32.totalorder %s3098_s10, %s3093_s7 }
  0x16   : > { %p3096_p13 = pnand %p3095_p12, %p3094_p11  ;;  %p3102_p4 = scmp.lt.u32.totalorder %s3093_s7, %s3275_s29 }
  0x17   : > { %p3101_p3 = por %p3100_p2, %p3099_p1 }
  0x18   : > { %p3097_p0 = pneg %p3096_p13 }
  0x19   : > { %p3103_p5 = por %p3102_p4, %p3101_p3 }
  0x1b   : > { %p3104_p6 = pnand %p3103_p5, %p3097_p0 }
  0x1d   : > { %3107 = shalt.err (!%p3104_p6)
}
  0x1e   : > { %s3108_s18 = scalar_lea.vmem %s3277_s4, 16384  ;;  %s3193_s19 = smov [#allocation2]  }
  0x1f   : > { %p3109_p8 = scmp.ne.s32.totalorder %s3277_s4, %s3108_s18  ;;  %s3113_s21 = sshll.u32 %s3193_s19, 4  ;;  %s3114_s21 = int_to_ptr.vmem [resolvable:$false] %s3113_s21 }
  0x20   : > { %s3115_s25 = scalar_lea.vmem %s3114_s21, 32768  ;;  %p3116_p9 = scmp.lt.s32.totalorder %s3277_s4, %s3114_s21 }
  0x21   : > { %p3111_p11 = pnand %p3109_p8, %p3095_p12  ;;  %p3117_p1 = scmp.lt.s32.totalorder %s3115_s25, %s3108_s18 }
  0x23   : > { %p3112_p13 = pneg %p3111_p11  ;;  %p3118_p2 = por %p3117_p1, %p3116_p9 }
  0x25   : > { %p3119_p3 = pnand %p3118_p2, %p3112_p13 }
  0x27   : > { %3122 = shalt.err (!%p3119_p3)
}
  0x28   : > { %s3194_s26 = smov 1024   ;;  %s3195_s27 = smov 256  }
  0x29   : > { %s3196_s28 = smov 16   ;;  %p2383_p0 = scmp.ge.s32.totalorder %s3191_s15, 1 }
  0x2a   : > { %2785 = dma.hbm_to_vmem [thread:$0]  (!%p3281_p10), %s3275_s29, 16384, %s3277_s4, %s140_s6, %s3194_s26, %s3195_s27, %s3196_s28  }
  0x2b   : > { %p177_p9 = scmp.lt.s32.totalorder %s3191_s15, 5  ;;  %s2380_s30 = sshll.u32 %s3268_s24, 2 }
  0x2c   : > { %s2571_s8 = sshll.u32 %s3191_s15, 6  ;;  %s164_s9 = scalar_lea.vmem [#allocation4], %s2380_s30 }
  0x2d   : > { %p3316_p4 = pnand %p2383_p0, %p177_p9  ;;  %s172_s10 = sshll.u32 %s164_s9, 4  ;;  %s173_s10 = int_to_ptr.vmem [resolvable:$true] %s172_s10 }
  0x2e   : > { %s3324_s18 = scalar_lea.hbm %s4080_s2, %s2571_s8  ;;  %s161_s29 = scalar_lea.sflag [#allocation5], %s3268_s24 }
  0x2f   : > { %s4087_s7 = scalar_select %p3316_p4, 1, 0 }
  0x30   : > { %s3123_s4 = scalar_lea.hbm %s3324_s18, 64  ;;  %s3128_s19 = scalar_lea.hbm %s4080_s2, 256 }
  0x31   : > { %p3124_p5 = scmp.ne.s32.totalorder %s3324_s18, %s3123_s4  ;;  %p3129_p11 = scmp.lt.u32.totalorder %s3324_s18, %s4080_s2 }
  0x32   : > { %p3130_p13 = scmp.lt.u32.totalorder %s3128_s19, %s3123_s4  ;;  %p3132_p2 = scmp.lt.u32.totalorder %s3123_s4, %s3324_s18 }
  0x33   : > { %p3126_p6 = pnand %p3124_p5, %p3095_p12 }
  0x34   : > { %p3131_p1 = por %p3130_p13, %p3129_p11 }
  0x35   : > { %p3127_p8 = pneg %p3126_p6 }
  0x36   : > { %p3133_p3 = por %p3132_p2, %p3131_p1 }
  0x38   : > { %p3134_p0 = pnand %p3133_p3, %p3127_p8 }
  0x3a   : > { %3137 = shalt.err (!%p3134_p0)
}
  0x3b   : > { %s3138_s24 = scalar_lea.vmem %s173_s10, 64  ;;  %s3197_s26 = smov [#allocation4]  }
  0x3c   : > { %p3139_p9 = scmp.ne.s32.totalorder %s173_s10, %s3138_s24  ;;  %s3143_s27 = sshll.u32 %s3197_s26, 4  ;;  %s3144_s27 = int_to_ptr.vmem [resolvable:$false] %s3143_s27 }
  0x3d   : > { %s3145_s28 = scalar_lea.vmem %s3144_s27, 128  ;;  %p3146_p7 = scmp.lt.s32.totalorder %s173_s10, %s3144_s27 }
  0x3e   : > { %p3141_p5 = pnand %p3139_p9, %p3095_p12  ;;  %p3147_p4 = scmp.lt.s32.totalorder %s3145_s28, %s3138_s24 }
  0x40   : > { %p3142_p6 = pneg %p3141_p5  ;;  %p3148_p11 = por %p3147_p4, %p3146_p7 }
  0x42   : > { %p3149_p13 = pnand %p3148_p11, %p3142_p6 }
  0x44   : > { %3152 = shalt.err (!%p3149_p13)
}
  0x45   : > { %2788 = dma.hbm_to_vmem [thread:$0]  (!%p3281_p10), %s3324_s18, 64, %s173_s10, %s161_s29  }
  0x46   : > { %p4088_p8 = scmp.ne.s32.totalorder %s4087_s7, 0 }
  0x47   : > { %s3349_s30 = sand.u32 (!%p4088_p8), 1, %s3183_s13   ;;  %p4089_p7 = scmp.ne.s32.totalorder (!%p4088_p8), %s4084_s22, 0 }
  0x48   : > { %181 = sbr.rel (%p4088_p8) target bundleno = 601 (0x259), region = 32  ;;  %s2384_s8 = sshll.u32 (!%p4088_p8), %s3349_s30, 10 }
  0x49   : > { %s184_s9 = scalar_lea.sflag (!%p4088_p8), [#allocation3], %s3349_s30  ;;  %s3353_s11 = scalar_lea.vmem (!%p4088_p8), [#allocation2], %s2384_s8 }
  0x4f   : > { %3170 = dma.done.wait (%p4089_p7), %s184_s9, 16384  }
  0x50   : > { %3172 = vsyncadd (%p4089_p7), %s184_s9, 4294950912  ;;  %s2385_s5 = sshll.u32 %s3349_s30, 2  ;;  %s193_s7 = scalar_lea.sflag [#allocation5], %s3349_s30 }
  0x51   : > { %s3361_s10 = scalar_lea.vmem [#allocation4], %s2385_s5 }
  0x52   : > { %3174 = dma.done.wait (%p4089_p7), %s193_s7, 64  }
  0x53   : > { %3176 = vsyncadd (%p4089_p7), %s193_s7, 4294967232  ;;  %v2825_v0 = vld [vmem:[%s3353_s11 + $0x4] ss:$16 sps:$4 sm:$0xff]   ;;  %v2827_v1 = vld [vmem:[%s3353_s11 + $0xc] ss:$16 sps:$4 sm:$0xff]   ;;  %s2777_s6 = smul.u32 800, %s3349_s30 }
  0x54   : > { %1320 = vmatprep.subr.bf16.mxu0 %v2825_v0  ;;  %v2829_v2 = vld [vmem:[%s3353_s11] ss:$16 sps:$4 sm:$0xff]   ;;  %v2830_v3 = vld [vmem:[%s3353_s11 + $0x8] ss:$16 sps:$4 sm:$0xff]   ;;  %1642 = vmatprep.subr.bf16.mxu1 %v2827_v1  ;;  %v2831_v4 = vld [vmem:[%s3353_s11 + $0x24] ss:$16 sps:$4 sm:$0xff]  }
  0x55   : > { %1321 = vmatpush1.bf16.msra.mxu0 %v2829_v2  ;;  %1643 = vmatpush1.bf16.msra.mxu1 %v2830_v3  ;;  %v2833_v5 = vld [vmem:[%s3353_s11 + $0x2c] ss:$16 sps:$4 sm:$0xff]   ;;  %v2835_v6 = vld [vmem:[%s3353_s11 + $0x20] ss:$16 sps:$4 sm:$0xff]   ;;  %v2836_v7 = vld [vmem:[%s3353_s11 + $0x28] ss:$16 sps:$4 sm:$0xff]  }
  0x56   : > { %1322 = vmatprep.subr.bf16.mxu0 %v2831_v4  ;;  %1644 = vmatprep.subr.bf16.mxu1 %v2833_v5  ;;  %v2837_v8 = vld [vmem:[%s3353_s11 + $0x44] ss:$16 sps:$4 sm:$0xff]   ;;  %v2839_v9 = vld [vmem:[%s3353_s11 + $0x4c] ss:$16 sps:$4 sm:$0xff]   ;;  %v2841_v10 = vld [vmem:[%s3353_s11 + $0x40] ss:$16 sps:$4 sm:$0xff]  }
  0x57   : > { %v2842_v11 = vld [vmem:[%s3353_s11 + $0x48] ss:$16 sps:$4 sm:$0xff]   ;;  %v2843_v12 = vld [vmem:[%s3353_s11 + $0x64] ss:$16 sps:$4 sm:$0xff]   ;;  %v2845_v13 = vld [vmem:[%s3353_s11 + $0x6c] ss:$16 sps:$4 sm:$0xff]  }
  0x58   : > { %v2847_v14 = vld [vmem:[%s3353_s11 + $0x60] ss:$16 sps:$4 sm:$0xff]   ;;  %v2848_v15 = vld [vmem:[%s3353_s11 + $0x68] ss:$16 sps:$4 sm:$0xff]   ;;  %v2849_v16 = vld [vmem:[%s3353_s11 + $0x84] ss:$16 sps:$4 sm:$0xff]  }
  0x59   : > { %1323 = vmatpush1.bf16.msra.mxu0 %v2835_v6  ;;  %1645 = vmatpush1.bf16.msra.mxu1 %v2836_v7  ;;  %v2851_v17 = vld [vmem:[%s3353_s11 + $0x8c] ss:$16 sps:$4 sm:$0xff]   ;;  %v2853_v18 = vld [vmem:[%s3353_s11 + $0x80] ss:$16 sps:$4 sm:$0xff]   ;;  %v2854_v19 = vld [vmem:[%s3353_s11 + $0x88] ss:$16 sps:$4 sm:$0xff]  }
  0x5a   : > { %1324 = vmatprep.subr.bf16.mxu0 %v2837_v8  ;;  %1646 = vmatprep.subr.bf16.mxu1 %v2839_v9  ;;  %v2855_v20 = vld [vmem:[%s3353_s11 + $0xa4] ss:$16 sps:$4 sm:$0xff]   ;;  %v2857_v21 = vld [vmem:[%s3353_s11 + $0xac] ss:$16 sps:$4 sm:$0xff]   ;;  %v2859_v22 = vld [vmem:[%s3353_s11 + $0xa0] ss:$16 sps:$4 sm:$0xff]  }
  0x5b   : > { %v2860_v23 = vld [vmem:[%s3353_s11 + $0xa8] ss:$16 sps:$4 sm:$0xff]   ;;  %v2861_v24 = vld [vmem:[%s3353_s11 + $0xc4] ss:$16 sps:$4 sm:$0xff]   ;;  %v2863_v25 = vld [vmem:[%s3353_s11 + $0xcc] ss:$16 sps:$4 sm:$0xff]  }
  0x5c   : > { %v2865_v26 = vld [vmem:[%s3353_s11 + $0xc0] ss:$16 sps:$4 sm:$0xff]   ;;  %v2866_v27 = vld [vmem:[%s3353_s11 + $0xc8] ss:$16 sps:$4 sm:$0xff]   ;;  %v2867_v28 = vld [vmem:[%s3353_s11 + $0xe4] ss:$16 sps:$4 sm:$0xff]  }
  0x5d   : > { %1325 = vmatpush1.bf16.msra.mxu0 %v2841_v10  ;;  %1647 = vmatpush1.bf16.msra.mxu1 %v2842_v11  ;;  %v2869_v29 = vld [vmem:[%s3353_s11 + $0xec] ss:$16 sps:$4 sm:$0xff]   ;;  %v2871_v30 = vld [vmem:[%s3353_s11 + $0xe0] ss:$16 sps:$4 sm:$0xff]   ;;  %v2872_v31 = vld [vmem:[%s3353_s11 + $0xe8] ss:$16 sps:$4 sm:$0xff]  }
  0x5e   : > { %1326 = vmatprep.subr.bf16.mxu0 %v2843_v12  ;;  %1648 = vmatprep.subr.bf16.mxu1 %v2845_v13  ;;  %v2873_v32 = vld [vmem:[%s3353_s11 + $0x104] ss:$16 sps:$4 sm:$0xff]   ;;  %v2875_v33 = vld [vmem:[%s3353_s11 + $0x10c] ss:$16 sps:$4 sm:$0xff]   ;;  %v2877_v34 = vld [vmem:[%s3353_s11 + $0x100] ss:$16 sps:$4 sm:$0xff]  }
  0x5f   : > { %v2878_v35 = vld [vmem:[%s3353_s11 + $0x108] ss:$16 sps:$4 sm:$0xff]   ;;  %v2879_v36 = vld [vmem:[%s3353_s11 + $0x124] ss:$16 sps:$4 sm:$0xff]   ;;  %v2881_v37 = vld [vmem:[%s3353_s11 + $0x12c] ss:$16 sps:$4 sm:$0xff]  }
  0x60   : > { %v2883_v38 = vld [vmem:[%s3353_s11 + $0x120] ss:$16 sps:$4 sm:$0xff]   ;;  %v2884_v39 = vld [vmem:[%s3353_s11 + $0x128] ss:$16 sps:$4 sm:$0xff]   ;;  %v2885_v40 = vld [vmem:[%s3353_s11 + $0x144] ss:$16 sps:$4 sm:$0xff]  }
  0x61   : > { %1327 = vmatpush1.bf16.msra.mxu0 %v2847_v14  ;;  %1649 = vmatpush1.bf16.msra.mxu1 %v2848_v15  ;;  %v2887_v41 = vld [vmem:[%s3353_s11 + $0x14c] ss:$16 sps:$4 sm:$0xff]   ;;  %v2889_v42 = vld [vmem:[%s3353_s11 + $0x140] ss:$16 sps:$4 sm:$0xff]   ;;  %v2890_v43 = vld [vmem:[%s3353_s11 + $0x148] ss:$16 sps:$4 sm:$0xff]  }
  0x62   : > { %1328 = vmatprep.subr.bf16.mxu0 %v2849_v16  ;;  %1650 = vmatprep.subr.bf16.mxu1 %v2851_v17  ;;  %v2891_v44 = vld [vmem:[%s3353_s11 + $0x164] ss:$16 sps:$4 sm:$0xff]   ;;  %v2893_v45 = vld [vmem:[%s3353_s11 + $0x16c] ss:$16 sps:$4 sm:$0xff]   ;;  %v2895_v46 = vld [vmem:[%s3353_s11 + $0x160] ss:$16 sps:$4 sm:$0xff]  }
  0x63   : > { %v2896_v47 = vld [vmem:[%s3353_s11 + $0x168] ss:$16 sps:$4 sm:$0xff]   ;;  %v2923_v48 = vld [vmem:[%s4078_s0 + $0x4] ss:$16 sps:$4 sm:$0xff]   ;;  %v2899_v50 = vld [vmem:[%s3353_s11 + $0x18c] ss:$16 sps:$4 sm:$0xff]  }
  0x64   : > { %v2897_v49 = vld [vmem:[%s3353_s11 + $0x184] ss:$16 sps:$4 sm:$0xff]   ;;  %1352 = vmatprep.mubr.bf16.mxu0 %v2923_v48  ;;  %1674 = vmatprep.mubr.bf16.mxu1 %v2923_v48  ;;  %v2901_v51 = vld [vmem:[%s3353_s11 + $0x180] ss:$16 sps:$4 sm:$0xff]   ;;  %v2902_v52 = vld [vmem:[%s3353_s11 + $0x188] ss:$16 sps:$4 sm:$0xff]  }
  0x65   : > { %1329 = vmatpush1.bf16.msra.mxu0 %v2853_v18  ;;  %1651 = vmatpush1.bf16.msra.mxu1 %v2854_v19  ;;  %v2903_v53 = vld [vmem:[%s3353_s11 + $0x1a4] ss:$16 sps:$4 sm:$0xff]   ;;  %v2905_v54 = vld [vmem:[%s3353_s11 + $0x1ac] ss:$16 sps:$4 sm:$0xff]   ;;  %v2907_v55 = vld [vmem:[%s3353_s11 + $0x1a0] ss:$16 sps:$4 sm:$0xff]  }
  0x66   : > { %1330 = vmatprep.subr.bf16.mxu0 %v2855_v20  ;;  %1652 = vmatprep.subr.bf16.mxu1 %v2857_v21  ;;  %v2908_v56 = vld [vmem:[%s3353_s11 + $0x1a8] ss:$16 sps:$4 sm:$0xff]   ;;  %v2909_v57 = vld [vmem:[%s3353_s11 + $0x1c4] ss:$16 sps:$4 sm:$0xff]   ;;  %v2911_v58 = vld [vmem:[%s3353_s11 + $0x1cc] ss:$16 sps:$4 sm:$0xff]  }
  0x67   : > { %v2913_v59 = vld [vmem:[%s3353_s11 + $0x1c0] ss:$16 sps:$4 sm:$0xff]   ;;  %v2914_v60 = vld [vmem:[%s3353_s11 + $0x1c8] ss:$16 sps:$4 sm:$0xff]   ;;  %v2915_v61 = vld [vmem:[%s3353_s11 + $0x1e4] ss:$16 sps:$4 sm:$0xff]  }
  0x68   : > { %v2917_v62 = vld [vmem:[%s3353_s11 + $0x1ec] ss:$16 sps:$4 sm:$0xff]   ;;  %v2919_v63 = vld [vmem:[%s3353_s11 + $0x1e0] ss:$16 sps:$4 sm:$0xff]   ;;  %v2920_v0 = vld [vmem:[%s3353_s11 + $0x1e8] ss:$16 sps:$4 sm:$0xff]  }
  0x69   : > { %1331 = vmatpush1.bf16.msra.mxu0 %v2859_v22  ;;  %1653 = vmatpush1.bf16.msra.mxu1 %v2860_v23  ;;  %v2926_v1 = vld [vmem:[%s3353_s11 + $0x204] ss:$16 sps:$4 sm:$0xff]   ;;  %v2929_v2 = vld [vmem:[%s3353_s11 + $0x20c] ss:$16 sps:$4 sm:$0xff]   ;;  %v2921_v3 = vld [vmem:[%s4078_s0] ss:$16 sps:$4 sm:$0xff]  }
  0x6a   : > { %1332 = vmatprep.subr.bf16.mxu0 %v2861_v24  ;;  %1654 = vmatprep.subr.bf16.mxu1 %v2863_v25  ;;  %v2924_v4 = vld [vmem:[%s3353_s11 + $0x200] ss:$16 sps:$4 sm:$0xff]   ;;  %v2927_v5 = vld [vmem:[%s3353_s11 + $0x208] ss:$16 sps:$4 sm:$0xff]   ;;  %v2930_v6 = vld [vmem:[%s4078_s0 + $0x24] ss:$16 sps:$4 sm:$0xff]  }
  0x6b   : > { %v2934_v7 = vld [vmem:[%s3353_s11 + $0x224] ss:$16 sps:$4 sm:$0xff]   ;;  %v2937_v8 = vld [vmem:[%s3353_s11 + $0x22c] ss:$16 sps:$4 sm:$0xff]   ;;  %v2932_v9 = vld [vmem:[%s3353_s11 + $0x220] ss:$16 sps:$4 sm:$0xff]  }
  0x6c   : > { %v2935_v10 = vld [vmem:[%s3353_s11 + $0x228] ss:$16 sps:$4 sm:$0xff]   ;;  %v2941_v11 = vld [vmem:[%s3353_s11 + $0x244] ss:$16 sps:$4 sm:$0xff]   ;;  %v2944_v12 = vld [vmem:[%s3353_s11 + $0x24c] ss:$16 sps:$4 sm:$0xff]  }
  0x6d   : > { %1333 = vmatpush1.bf16.msra.mxu0 %v2865_v26  ;;  %1655 = vmatpush1.bf16.msra.mxu1 %v2866_v27  ;;  %v2938_v13 = vld [vmem:[%s4078_s0 + $0x20] ss:$16 sps:$4 sm:$0xff]   ;;  %v2942_v15 = vld [vmem:[%s3353_s11 + $0x248] ss:$16 sps:$4 sm:$0xff]   ;;  %v2945_v16 = vld [vmem:[%s4078_s0 + $0x44] ss:$16 sps:$4 sm:$0xff]  }
  0x6e   : > { %1334 = vmatprep.subr.bf16.mxu0 %v2867_v28  ;;  %1656 = vmatprep.subr.bf16.mxu1 %v2869_v29  ;;  %v2939_v14 = vld [vmem:[%s3353_s11 + $0x240] ss:$16 sps:$4 sm:$0xff]   ;;  %v2950_v17 = vld [vmem:[%s3353_s11 + $0x264] ss:$16 sps:$4 sm:$0xff]   ;;  %v2953_v18 = vld [vmem:[%s3353_s11 + $0x26c] ss:$16 sps:$4 sm:$0xff]  }
  0x6f   : > { %v2948_v19 = vld [vmem:[%s3353_s11 + $0x260] ss:$16 sps:$4 sm:$0xff]   ;;  %v2951_v20 = vld [vmem:[%s3353_s11 + $0x268] ss:$16 sps:$4 sm:$0xff]   ;;  %v2959_v21 = vld [vmem:[%s3353_s11 + $0x284] ss:$16 sps:$4 sm:$0xff]  }
  0x70   : > { %v2962_v22 = vld [vmem:[%s3353_s11 + $0x28c] ss:$16 sps:$4 sm:$0xff]   ;;  %v2947_v23 = vld [vmem:[%s4078_s0 + $0x40] ss:$16 sps:$4 sm:$0xff]   ;;  %v2954_v24 = vld [vmem:[%s4078_s0 + $0x64] ss:$16 sps:$4 sm:$0xff]  }
  0x71   : > { %1335 = vmatpush1.bf16.msra.mxu0 %v2871_v30  ;;  %1657 = vmatpush1.bf16.msra.mxu1 %v2872_v31  ;;  %v2957_v25 = vld [vmem:[%s3353_s11 + $0x280] ss:$16 sps:$4 sm:$0xff]   ;;  %v2960_v26 = vld [vmem:[%s3353_s11 + $0x288] ss:$16 sps:$4 sm:$0xff]   ;;  %v2968_v27 = vld [vmem:[%s3353_s11 + $0x2a4] ss:$16 sps:$4 sm:$0xff]  }
  0x72   : > { %1336 = vmatprep.subr.bf16.mxu0 %v2873_v32  ;;  %1658 = vmatprep.subr.bf16.mxu1 %v2875_v33  ;;  %v2971_v28 = vld [vmem:[%s3353_s11 + $0x2ac] ss:$16 sps:$4 sm:$0xff]   ;;  %v2966_v29 = vld [vmem:[%s3353_s11 + $0x2a0] ss:$16 sps:$4 sm:$0xff]   ;;  %v2969_v30 = vld [vmem:[%s3353_s11 + $0x2a8] ss:$16 sps:$4 sm:$0xff]  }
  0x73   : > { %v2976_v31 = vld [vmem:[%s3353_s11 + $0x2c4] ss:$16 sps:$4 sm:$0xff]   ;;  %v2979_v32 = vld [vmem:[%s3353_s11 + $0x2cc] ss:$16 sps:$4 sm:$0xff]   ;;  %v2956_v33 = vld [vmem:[%s4078_s0 + $0x60] ss:$16 sps:$4 sm:$0xff]  }
  0x74   : > { %v3004_v48 = vld [vmem:[%s3353_s11 + $0x32c] ss:$16 sps:$4 sm:$0xff]   ;;  %s3659_s30 = scalar_lea.vmem [#allocation6], %s2777_s6  ;;  %p4090_p10 = scmp.ne.s32.totalorder %s4085_s23, 0 }
  0x75   : > { %1337 = vmatpush1.bf16.msra.mxu0 %v2877_v34  ;;  %1659 = vmatpush1.bf16.msra.mxu1 %v2878_v35  ;;  %v2963_v34 = vld [vmem:[%s4078_s0 + $0x84] ss:$16 sps:$4 sm:$0xff]   ;;  %v2974_v35 = vld [vmem:[%s3353_s11 + $0x2c0] ss:$16 sps:$4 sm:$0xff]  }
  0x76   : > { %1338 = vmatprep.subr.bf16.mxu0 %v2879_v36  ;;  %1660 = vmatprep.subr.bf16.mxu1 %v2881_v37  ;;  %v2977_v36 = vld [vmem:[%s3353_s11 + $0x2c8] ss:$16 sps:$4 sm:$0xff]   ;;  %v2983_v37 = vld [vmem:[%s3353_s11 + $0x2e4] ss:$16 sps:$4 sm:$0xff]  }
  0x79   : > { %1339 = vmatpush1.bf16.msra.mxu0 %v2883_v38  ;;  %1661 = vmatpush1.bf16.msra.mxu1 %v2884_v39  ;;  %v2986_v38 = vld [vmem:[%s3353_s11 + $0x2ec] ss:$16 sps:$4 sm:$0xff]   ;;  %v2981_v39 = vld [vmem:[%s3353_s11 + $0x2e0] ss:$16 sps:$4 sm:$0xff]  }
  0x7a   : > { %1340 = vmatprep.subr.bf16.mxu0 %v2885_v40  ;;  %1662 = vmatprep.subr.bf16.mxu1 %v2887_v41  ;;  %v2984_v40 = vld [vmem:[%s3353_s11 + $0x2e8] ss:$16 sps:$4 sm:$0xff]   ;;  %v2992_v41 = vld [vmem:[%s3353_s11 + $0x304] ss:$16 sps:$4 sm:$0xff]  }
  0x7d   : > { %1341 = vmatpush1.bf16.msra.mxu0 %v2889_v42  ;;  %1663 = vmatpush1.bf16.msra.mxu1 %v2890_v43  ;;  %v2995_v42 = vld [vmem:[%s3353_s11 + $0x30c] ss:$16 sps:$4 sm:$0xff]   ;;  %v2965_v43 = vld [vmem:[%s4078_s0 + $0x80] ss:$16 sps:$4 sm:$0xff]  }
  0x7e   : > { %1342 = vmatprep.subr.bf16.mxu0 %v2891_v44  ;;  %1664 = vmatprep.subr.bf16.mxu1 %v2893_v45  ;;  %v2972_v44 = vld [vmem:[%s4078_s0 + $0xa4] ss:$16 sps:$4 sm:$0xff]   ;;  %v2990_v45 = vld [vmem:[%s3353_s11 + $0x300] ss:$16 sps:$4 sm:$0xff]  }
  0x81   : > { %1343 = vmatpush1.bf16.msra.mxu0 %v2895_v46  ;;  %1665 = vmatpush1.bf16.msra.mxu1 %v2896_v47  ;;  %v2993_v46 = vld [vmem:[%s3353_s11 + $0x308] ss:$16 sps:$4 sm:$0xff]   ;;  %v3001_v47 = vld [vmem:[%s3353_s11 + $0x324] ss:$16 sps:$4 sm:$0xff]  }
  0x82   : > { %1344 = vmatprep.subr.bf16.mxu0 %v2897_v49  ;;  %1666 = vmatprep.subr.bf16.mxu1 %v2899_v50  ;;  %v2999_v49 = vld [vmem:[%s3353_s11 + $0x320] ss:$16 sps:$4 sm:$0xff]   ;;  %v3002_v50 = vld [vmem:[%s3353_s11 + $0x328] ss:$16 sps:$4 sm:$0xff]  }
  0x85   : > { %1345 = vmatpush1.bf16.msra.mxu0 %v2901_v51  ;;  %1667 = vmatpush1.bf16.msra.mxu1 %v2902_v52  ;;  %v3010_v51 = vld [vmem:[%s3353_s11 + $0x344] ss:$16 sps:$4 sm:$0xff]   ;;  %v3013_v52 = vld [vmem:[%s3353_s11 + $0x34c] ss:$16 sps:$4 sm:$0xff]  }
  0x86   : > { %1346 = vmatprep.subr.bf16.mxu0 %v2903_v53  ;;  %1668 = vmatprep.subr.bf16.mxu1 %v2905_v54  ;;  %v2980_v53 = vld [vmem:[%s4078_s0 + $0xa0] ss:$16 sps:$4 sm:$0xff]   ;;  %v2987_v54 = vld [vmem:[%s4078_s0 + $0xc4] ss:$16 sps:$4 sm:$0xff]  }
  0x89   : > { %1347 = vmatpush1.bf16.msra.mxu0 %v2907_v55  ;;  %1669 = vmatpush1.bf16.msra.mxu1 %v2908_v56  ;;  %v3008_v55 = vld [vmem:[%s3353_s11 + $0x340] ss:$16 sps:$4 sm:$0xff]   ;;  %v3011_v56 = vld [vmem:[%s3353_s11 + $0x348] ss:$16 sps:$4 sm:$0xff]  }
  0x8a   : > { %1348 = vmatprep.subr.bf16.mxu0 %v2909_v57  ;;  %1670 = vmatprep.subr.bf16.mxu1 %v2911_v58  ;;  %v3019_v57 = vld [vmem:[%s3353_s11 + $0x364] ss:$16 sps:$4 sm:$0xff]   ;;  %v3022_v58 = vld [vmem:[%s3353_s11 + $0x36c] ss:$16 sps:$4 sm:$0xff]  }
  0x8d   : > { %1349 = vmatpush1.bf16.msra.mxu0 %v2913_v59  ;;  %1671 = vmatpush1.bf16.msra.mxu1 %v2914_v60  ;;  %v3017_v59 = vld [vmem:[%s3353_s11 + $0x360] ss:$16 sps:$4 sm:$0xff]   ;;  %v3020_v60 = vld [vmem:[%s3353_s11 + $0x368] ss:$16 sps:$4 sm:$0xff]  }
  0x8e   : > { %1350 = vmatprep.subr.bf16.mxu0 %v2915_v61  ;;  %1672 = vmatprep.subr.bf16.mxu1 %v2917_v62  ;;  %v3025_v61 = vld [vmem:[%s3353_s11 + $0x384] ss:$16 sps:$4 sm:$0xff]   ;;  %v3028_v62 = vld [vmem:[%s3353_s11 + $0x38c] ss:$16 sps:$4 sm:$0xff]  }
  0x91   : > { %1351 = vmatpush1.bf16.msra.mxu0 %v2919_v63  ;;  %1673 = vmatpush1.bf16.msra.mxu1 %v2920_v0  ;;  %v2989_v63 = vld [vmem:[%s4078_s0 + $0xc0] ss:$16 sps:$4 sm:$0xff]   ;;  %v2996_v0 = vld [vmem:[%s4078_s0 + $0xe4] ss:$16 sps:$4 sm:$0xff]  }
  0x92   : > { %1481 = vmatprep.subr.bf16.mxu0 %v2926_v1  ;;  %1803 = vmatprep.subr.bf16.mxu1 %v2929_v2  ;;  %v3023_v1 = vld [vmem:[%s3353_s11 + $0x380] ss:$16 sps:$4 sm:$0xff]   ;;  %v3026_v2 = vld [vmem:[%s3353_s11 + $0x388] ss:$16 sps:$4 sm:$0xff]  }
  0x94   : > { %1353 = vmatmul.mubr.bf16.vlgmr.msra.gmra.mrb[0].mxu0 %v2921_v3  ;;  %1675 = vmatmul.mubr.bf16.vlgmr.msra.gmra.mrb[0].mxu1 %v2921_v3  ;;  %v3034_v3 = vld [vmem:[%s3353_s11 + $0x3a4] ss:$16 sps:$4 sm:$0xff]  }
  0x95   : > { %1482 = vmatpush1.bf16.msra.mxu0 %v2924_v4  ;;  %1804 = vmatpush1.bf16.msra.mxu1 %v2927_v5  ;;  %v3037_v4 = vld [vmem:[%s3353_s11 + $0x3ac] ss:$16 sps:$4 sm:$0xff]   ;;  %v3032_v5 = vld [vmem:[%s3353_s11 + $0x3a0] ss:$16 sps:$4 sm:$0xff]  }
  0x96   : > { %1362 = vmatprep.mubr.bf16.mxu0 %v2930_v6  ;;  %1483 = vmatprep.subr.bf16.mxu0 %v2934_v7  ;;  %v3043_v7 = vld [vmem:[%s3353_s11 + $0x3c4] ss:$16 sps:$4 sm:$0xff]  }
  0x97   : > { %1684 = vmatprep.mubr.bf16.mxu1 %v2930_v6  ;;  %1805 = vmatprep.subr.bf16.mxu1 %v2937_v8  ;;  %v3035_v6 = vld [vmem:[%s3353_s11 + $0x3a8] ss:$16 sps:$4 sm:$0xff]   ;;  %v3046_v8 = vld [vmem:[%s3353_s11 + $0x3cc] ss:$16 sps:$4 sm:$0xff]  }
  0x99   : > { %1484 = vmatpush1.bf16.msra.mxu0 %v2932_v9  ;;  %1806 = vmatpush1.bf16.msra.mxu1 %v2935_v10  ;;  %v2998_v9 = vld [vmem:[%s4078_s0 + $0xe0] ss:$16 sps:$4 sm:$0xff]   ;;  %v3005_v10 = vld [vmem:[%s4078_s0 + $0x104] ss:$16 sps:$4 sm:$0xff]  }
  0x9a   : > { %1485 = vmatprep.subr.bf16.mxu0 %v2941_v11  ;;  %1807 = vmatprep.subr.bf16.mxu1 %v2944_v12  ;;  %v3041_v11 = vld [vmem:[%s3353_s11 + $0x3c0] ss:$16 sps:$4 sm:$0xff]   ;;  %v3044_v12 = vld [vmem:[%s3353_s11 + $0x3c8] ss:$16 sps:$4 sm:$0xff]  }
  0x9c   : > { %1363 = vmatmul.mubr.bf16.gmra.mrb[4].mxu0 %v2938_v13  ;;  %1685 = vmatmul.mubr.bf16.gmra.mrb[4].mxu1 %v2938_v13  ;;  %v3051_v13 = vld [vmem:[%s3353_s11 + $0x3e4] ss:$16 sps:$4 sm:$0xff]  }
  0x9d   : > { %1486 = vmatpush1.bf16.msra.mxu0 %v2939_v14  ;;  %1808 = vmatpush1.bf16.msra.mxu1 %v2942_v15  ;;  %v3054_v14 = vld [vmem:[%s3353_s11 + $0x3ec] ss:$16 sps:$4 sm:$0xff]   ;;  %v3049_v15 = vld [vmem:[%s3353_s11 + $0x3e0] ss:$16 sps:$4 sm:$0xff]  }
  0x9e   : > { %1372 = vmatprep.mubr.bf16.mxu0 %v2945_v16  ;;  %1694 = vmatprep.mubr.bf16.mxu1 %v2945_v16  ;;  %v3052_v16 = vld [vmem:[%s3353_s11 + $0x3e8] ss:$16 sps:$4 sm:$0xff]  }
  0x9f   : > { %1487 = vmatprep.subr.bf16.mxu0 %v2950_v17  ;;  %1809 = vmatprep.subr.bf16.mxu1 %v2953_v18  ;;  %v3007_v17 = vld [vmem:[%s4078_s0 + $0x100] ss:$16 sps:$4 sm:$0xff]   ;;  %v3014_v18 = vld [vmem:[%s4078_s0 + $0x124] ss:$16 sps:$4 sm:$0xff]  }
  0xa1   : > { %1488 = vmatpush1.bf16.msra.mxu0 %v2948_v19  ;;  %1810 = vmatpush1.bf16.msra.mxu1 %v2951_v20  ;;  %v3016_v19 = vld [vmem:[%s4078_s0 + $0x120] ss:$16 sps:$4 sm:$0xff]   ;;  %v3029_v20 = vld [vmem:[%s4078_s0 + $0x144] ss:$16 sps:$4 sm:$0xff]  }
  0xa2   : > { %1489 = vmatprep.subr.bf16.mxu0 %v2959_v21  ;;  %1811 = vmatprep.subr.bf16.mxu1 %v2962_v22  ;;  %v3031_v21 = vld [vmem:[%s4078_s0 + $0x140] ss:$16 sps:$4 sm:$0xff]   ;;  %v3038_v22 = vld [vmem:[%s4078_s0 + $0x164] ss:$16 sps:$4 sm:$0xff]  }
  0xa4   : > { %1373 = vmatmul.mubr.bf16.gmra.mrb[8].mxu0 %v2947_v23  ;;  %1695 = vmatmul.mubr.bf16.gmra.mrb[8].mxu1 %v2947_v23  ;;  %v274_v23 = vld [vmem:[%s4078_s0 + $0x180] sm:$0x33] }
  0xa5   : > { %1382 = vmatprep.mubr.bf16.mxu0 %v2954_v24  ;;  %1704 = vmatprep.mubr.bf16.mxu1 %v2954_v24  ;;  %v3040_v24 = vld [vmem:[%s4078_s0 + $0x160] ss:$16 sps:$4 sm:$0xff]  }
  0xa6   : > { %1490 = vmatpush1.bf16.msra.mxu0 %v2957_v25  ;;  %1812 = vmatpush1.bf16.msra.mxu1 %v2960_v26  ;;  %v2435_v25 = vcombine.high %v274_v23, %v274_v23  ;;  %v2434_v26 = vcombine.low %v274_v23, %v274_v23 }
  0xa7   : > { %1491 = vmatprep.subr.bf16.mxu0 %v2968_v27  ;;  %1813 = vmatprep.subr.bf16.mxu1 %v2971_v28  ;;  %v3057_v27 = vld [vmem:[%s4078_s0 + $0xc] ss:$16 sps:$4 sm:$0xff]   ;;  %v3055_v28 = vld [vmem:[%s4078_s0 + $0x8] ss:$16 sps:$4 sm:$0xff]  }
  0xaa   : > { %1492 = vmatpush1.bf16.msra.mxu0 %v2966_v29  ;;  %1814 = vmatpush1.bf16.msra.mxu1 %v2969_v30  ;;  %v3058_v29 = vld [vmem:[%s4078_s0 + $0x2c] ss:$16 sps:$4 sm:$0xff]   ;;  %v3060_v30 = vld [vmem:[%s4078_s0 + $0x28] ss:$16 sps:$4 sm:$0xff]  }
  0xab   : > { %1493 = vmatprep.subr.bf16.mxu0 %v2976_v31  ;;  %1815 = vmatprep.subr.bf16.mxu1 %v2979_v32  ;;  %v3061_v31 = vld [vmem:[%s4078_s0 + $0x4c] ss:$16 sps:$4 sm:$0xff]   ;;  %v3063_v32 = vld [vmem:[%s4078_s0 + $0x48] ss:$16 sps:$4 sm:$0xff]  }
  0xac   : > { %1383 = vmatmul.mubr.bf16.gmra.mrb[12].mxu0 %v2956_v33  ;;  %1705 = vmatmul.mubr.bf16.gmra.mrb[12].mxu1 %v2956_v33  ;;  %v3064_v33 = vld [vmem:[%s4078_s0 + $0x6c] ss:$16 sps:$4 sm:$0xff]  }
  0xad   : > { %1392 = vmatprep.mubr.bf16.mxu0 %v2963_v34  ;;  %1714 = vmatprep.mubr.bf16.mxu1 %v2963_v34  ;;  %v3066_v34 = vld [vmem:[%s4078_s0 + $0x68] ss:$16 sps:$4 sm:$0xff]  }
  0xae   : > { %1494 = vmatpush1.bf16.msra.mxu0 %v2974_v35  ;;  %1816 = vmatpush1.bf16.msra.mxu1 %v2977_v36  ;;  %v3067_v35 = vld [vmem:[%s4078_s0 + $0x8c] ss:$16 sps:$4 sm:$0xff]   ;;  %v3069_v36 = vld [vmem:[%s4078_s0 + $0x88] ss:$16 sps:$4 sm:$0xff]  }
  0xaf   : > { %1495 = vmatprep.subr.bf16.mxu0 %v2983_v37  ;;  %1817 = vmatprep.subr.bf16.mxu1 %v2986_v38  ;;  %v3070_v37 = vld [vmem:[%s4078_s0 + $0xac] ss:$16 sps:$4 sm:$0xff]   ;;  %v3072_v38 = vld [vmem:[%s4078_s0 + $0xa8] ss:$16 sps:$4 sm:$0xff]  }
  0xb2   : > { %1496 = vmatpush1.bf16.msra.mxu0 %v2981_v39  ;;  %1818 = vmatpush1.bf16.msra.mxu1 %v2984_v40  ;;  %v3073_v39 = vld [vmem:[%s4078_s0 + $0xcc] ss:$16 sps:$4 sm:$0xff]   ;;  %v3075_v40 = vld [vmem:[%s4078_s0 + $0xc8] ss:$16 sps:$4 sm:$0xff]  }
  0xb3   : > { %1497 = vmatprep.subr.bf16.mxu0 %v2992_v41  ;;  %1819 = vmatprep.subr.bf16.mxu1 %v2995_v42  ;;  %v3076_v41 = vld [vmem:[%s4078_s0 + $0xec] ss:$16 sps:$4 sm:$0xff]   ;;  %v3078_v42 = vld [vmem:[%s4078_s0 + $0xe8] ss:$16 sps:$4 sm:$0xff]  }
  0xb4   : > { %1393 = vmatmul.mubr.bf16.gmra.mrb[16].mxu0 %v2965_v43  ;;  %1715 = vmatmul.mubr.bf16.gmra.mrb[16].mxu1 %v2965_v43  ;;  %v3079_v43 = vld [vmem:[%s4078_s0 + $0x10c] ss:$16 sps:$4 sm:$0xff]  }
  0xb5   : > { %1402 = vmatprep.mubr.bf16.mxu0 %v2972_v44  ;;  %1724 = vmatprep.mubr.bf16.mxu1 %v2972_v44  ;;  %v3081_v44 = vld [vmem:[%s4078_s0 + $0x108] ss:$16 sps:$4 sm:$0xff]  }
  0xb6   : > { %1498 = vmatpush1.bf16.msra.mxu0 %v2990_v45  ;;  %1820 = vmatpush1.bf16.msra.mxu1 %v2993_v46  ;;  %v3082_v45 = vld [vmem:[%s4078_s0 + $0x12c] ss:$16 sps:$4 sm:$0xff]   ;;  %v3084_v46 = vld [vmem:[%s4078_s0 + $0x128] ss:$16 sps:$4 sm:$0xff]  }
  0xb7   : > { %1499 = vmatprep.subr.bf16.mxu0 %v3001_v47  ;;  %1821 = vmatprep.subr.bf16.mxu1 %v3004_v48  ;;  %v3085_v47 = vld [vmem:[%s4078_s0 + $0x14c] ss:$16 sps:$4 sm:$0xff]   ;;  %v3087_v48 = vld [vmem:[%s4078_s0 + $0x148] ss:$16 sps:$4 sm:$0xff]  }
  0xba   : > { %1500 = vmatpush1.bf16.msra.mxu0 %v2999_v49  ;;  %1822 = vmatpush1.bf16.msra.mxu1 %v3002_v50  ;;  %v3088_v49 = vld [vmem:[%s4078_s0 + $0x16c] ss:$16 sps:$4 sm:$0xff]  }
  0xbb   : > { %1501 = vmatprep.subr.bf16.mxu0 %v3010_v51  ;;  %1823 = vmatprep.subr.bf16.mxu1 %v3013_v52  ;;  %v275_v50 = vld [vmem:[%s4078_s0 + $0x188] sm:$0x33] }
  0xbc   : > { %1403 = vmatmul.mubr.bf16.gmra.mrb[20].mxu0 %v2980_v53  ;;  %1725 = vmatmul.mubr.bf16.gmra.mrb[20].mxu1 %v2980_v53  ;;  %v3090_v51 = vld [vmem:[%s4078_s0 + $0x168] ss:$16 sps:$4 sm:$0xff]   ;;  %v2437_v52 = vcombine.high %v275_v50, %v275_v50  ;;  %v2436_v53 = vcombine.low %v275_v50, %v275_v50 }
  0xbd   : > { %1412 = vmatprep.mubr.bf16.mxu0 %v2987_v54  ;;  %1734 = vmatprep.mubr.bf16.mxu1 %v2987_v54  ;;  %v406_v54 = vlaneseq }
  0xbe   : > { %1502 = vmatpush1.bf16.msra.mxu0 %v3008_v55  ;;  %1824 = vmatpush1.bf16.msra.mxu1 %v3011_v56 }
  0xbf   : > { %1503 = vmatprep.subr.bf16.mxu0 %v3019_v57  ;;  %1825 = vmatprep.subr.bf16.mxu1 %v3022_v58  ;;  %v407_v55 = vshrl.u32 %v406_v54, 7  ;;  %v404_v58 = vld [vmem:[%s3361_s10] sm:$0xf]  ;;  %s2572_s10 = sshll.u32 (%p4090_p10), %s3237_s16, 5 }
  0xc0   : > { %s3866_s25 = scalar_lea.vmem (%p4090_p10), %s4081_s3, %s2572_s10 }
  0xc1   : > { %v408_v56 = vsub.s32 0, %v407_v55  ;;  %v416_v57 = vsub.s32 2, %v407_v55 }
  0xc2   : > { %1504 = vmatpush1.bf16.msra.mxu0 %v3017_v59  ;;  %1826 = vmatpush1.bf16.msra.mxu1 %v3020_v60  ;;  %v412_v59 = vsub.s32 1, %v407_v55  ;;  %v420_v60 = vsub.s32 3, %v407_v55 }
  0xc3   : > { %1505 = vmatprep.subr.bf16.mxu0 %v3025_v61  ;;  %1827 = vmatprep.subr.bf16.mxu1 %v3028_v62  ;;  %v3647_v61 = vrot.slane %v404_v58, %v408_v56  ;;  %v3649_v62 = vrot.slane %v404_v58, %v416_v57 }
  0xc4   : > { %1413 = vmatmul.mubr.bf16.gmra.mrb[24].mxu0 %v2989_v63  ;;  %1735 = vmatmul.mubr.bf16.gmra.mrb[24].mxu1 %v2989_v63  ;;  %v3651_v63 = vrot.slane %v404_v58, %v412_v59 }
  0xc5   : > { %1422 = vmatprep.mubr.bf16.mxu0 %v2996_v0  ;;  %1744 = vmatprep.mubr.bf16.mxu1 %v2996_v0  ;;  %v3653_v0 = vrot.slane %v404_v58, %v420_v60 }
  0xc6   : > { %1506 = vmatpush1.bf16.msra.mxu0 %v3023_v1  ;;  %1828 = vmatpush1.bf16.msra.mxu1 %v3026_v2 }
  0xc7   : > { %1507 = vmatprep.subr.bf16.mxu0 %v3034_v3  ;;  %1829 = vmatprep.subr.bf16.mxu1 %v3037_v4 }
  0xca   : > { %1508 = vmatpush1.bf16.msra.mxu0 %v3032_v5  ;;  %1830 = vmatpush1.bf16.msra.mxu1 %v3035_v6 }
  0xcb   : > { %1509 = vmatprep.subr.bf16.mxu0 %v3043_v7  ;;  %1831 = vmatprep.subr.bf16.mxu1 %v3046_v8 }
  0xcc   : > { %1423 = vmatmul.mubr.bf16.gmra.mrb[28].mxu0 %v2998_v9  ;;  %1745 = vmatmul.mubr.bf16.gmra.mrb[28].mxu1 %v2998_v9 }
  0xcd   : > { %1432 = vmatprep.mubr.bf16.mxu0 %v3005_v10  ;;  %1754 = vmatprep.mubr.bf16.mxu1 %v3005_v10 }
  0xce   : > { %1510 = vmatpush1.bf16.msra.mxu0 %v3041_v11  ;;  %1832 = vmatpush1.bf16.msra.mxu1 %v3044_v12 }
  0xcf   : > { %1511 = vmatprep.subr.bf16.mxu0 %v3051_v13  ;;  %1833 = vmatprep.subr.bf16.mxu1 %v3054_v14 }
  0xd2   : > { %1512 = vmatpush1.bf16.msra.mxu0 %v3049_v15  ;;  %1834 = vmatpush1.bf16.msra.mxu1 %v3052_v16 }
  0xd4   : > { %1433 = vmatmul.mubr.bf16.gmra.mrb[32].mxu0 %v3007_v17  ;;  %1755 = vmatmul.mubr.bf16.gmra.mrb[32].mxu1 %v3007_v17 }
  0xd5   : > { %1442 = vmatprep.mubr.bf16.mxu0 %v3014_v18  ;;  %1764 = vmatprep.mubr.bf16.mxu1 %v3014_v18 }
  0xdc   : > { %1443 = vmatmul.mubr.bf16.gmra.mrb[36].mxu0 %v3016_v19  ;;  %1765 = vmatmul.mubr.bf16.gmra.mrb[36].mxu1 %v3016_v19 }
  0xdd   : > { %1452 = vmatprep.mubr.bf16.mxu0 %v3029_v20  ;;  %1774 = vmatprep.mubr.bf16.mxu1 %v3029_v20 }
  0xe4   : > { %1453 = vmatmul.mubr.bf16.gmra.mrb[40].mxu0 %v3031_v21  ;;  %1775 = vmatmul.mubr.bf16.gmra.mrb[40].mxu1 %v3031_v21 }
  0xe5   : > { %1462 = vmatprep.mubr.bf16.mxu0 %v3038_v22  ;;  %1784 = vmatprep.mubr.bf16.mxu1 %v3038_v22 }
  0xec   : > { %1463 = vmatmul.mubr.bf16.gmra.mrb[44].mxu0 %v3040_v24  ;;  %1785 = vmatmul.mubr.bf16.gmra.mrb[44].mxu1 %v3040_v24 }
  0xed   : > { %1472 = vmatprep.mubr.bf16.mxu0 %v2435_v25  ;;  %1794 = vmatprep.mubr.bf16.mxu1 %v2435_v25 }
  0xf4   : > { %1473 = vmatmul.mubr.bf16.gmra.mrb[48].mxu0 %v2434_v26  ;;  %1795 = vmatmul.mubr.bf16.gmra.mrb[48].mxu1 %v2434_v26 }
  0xf5   : > { %1513 = vmatprep.mubr.bf16.mxu0 %v3057_v27  ;;  %1835 = vmatprep.mubr.bf16.mxu1 %v3057_v27 }
  0xfc   : > { %1514 = vmatmul.mubr.bf16.vlgmr.msra.gmra.mrb[0].mxu0 %v3055_v28  ;;  %1836 = vmatmul.mubr.bf16.vlgmr.msra.gmra.mrb[0].mxu1 %v3055_v28 }
  0xfd   : > { %1523 = vmatprep.mubr.bf16.mxu0 %v3058_v29  ;;  %1845 = vmatprep.mubr.bf16.mxu1 %v3058_v29 }
 0x104   : > { %1524 = vmatmul.mubr.bf16.gmra.mrb[4].mxu0 %v3060_v30  ;;  %1846 = vmatmul.mubr.bf16.gmra.mrb[4].mxu1 %v3060_v30 }
 0x105   : > { %1533 = vmatprep.mubr.bf16.mxu0 %v3061_v31  ;;  %1855 = vmatprep.mubr.bf16.mxu1 %v3061_v31 }
 0x10c   : > { %1534 = vmatmul.mubr.bf16.gmra.mrb[8].mxu0 %v3063_v32  ;;  %1856 = vmatmul.mubr.bf16.gmra.mrb[8].mxu1 %v3063_v32 }
 0x10d   : > { %1543 = vmatprep.mubr.bf16.mxu0 %v3064_v33  ;;  %1865 = vmatprep.mubr.bf16.mxu1 %v3064_v33 }
 0x114   : > { %1544 = vmatmul.mubr.bf16.gmra.mrb[12].mxu0 %v3066_v34  ;;  %1866 = vmatmul.mubr.bf16.gmra.mrb[12].mxu1 %v3066_v34 }
 0x115   : > { %1553 = vmatprep.mubr.bf16.mxu0 %v3067_v35  ;;  %1875 = vmatprep.mubr.bf16.mxu1 %v3067_v35 }
 0x11c   : > { %1554 = vmatmul.mubr.bf16.gmra.mrb[16].mxu0 %v3069_v36  ;;  %1876 = vmatmul.mubr.bf16.gmra.mrb[16].mxu1 %v3069_v36 }
 0x11d   : > { %1563 = vmatprep.mubr.bf16.mxu0 %v3070_v37  ;;  %1885 = vmatprep.mubr.bf16.mxu1 %v3070_v37 }
 0x124   : > { %1564 = vmatmul.mubr.bf16.gmra.mrb[20].mxu0 %v3072_v38  ;;  %1886 = vmatmul.mubr.bf16.gmra.mrb[20].mxu1 %v3072_v38 }
 0x125   : > { %1573 = vmatprep.mubr.bf16.mxu0 %v3073_v39  ;;  %1895 = vmatprep.mubr.bf16.mxu1 %v3073_v39 }
 0x12c   : > { %1574 = vmatmul.mubr.bf16.gmra.mrb[24].mxu0 %v3075_v40  ;;  %1896 = vmatmul.mubr.bf16.gmra.mrb[24].mxu1 %v3075_v40 }
 0x12d   : > { %1583 = vmatprep.mubr.bf16.mxu0 %v3076_v41  ;;  %1905 = vmatprep.mubr.bf16.mxu1 %v3076_v41 }
 0x134   : > { %1584 = vmatmul.mubr.bf16.gmra.mrb[28].mxu0 %v3078_v42  ;;  %1906 = vmatmul.mubr.bf16.gmra.mrb[28].mxu1 %v3078_v42 }
 0x135   : > { %1593 = vmatprep.mubr.bf16.mxu0 %v3079_v43  ;;  %1915 = vmatprep.mubr.bf16.mxu1 %v3079_v43 }
 0x13c   : > { %1594 = vmatmul.mubr.bf16.gmra.mrb[32].mxu0 %v3081_v44  ;;  %1916 = vmatmul.mubr.bf16.gmra.mrb[32].mxu1 %v3081_v44 }
 0x13d   : > { %1603 = vmatprep.mubr.bf16.mxu0 %v3082_v45  ;;  %1925 = vmatprep.mubr.bf16.mxu1 %v3082_v45 }
 0x144   : > { %1604 = vmatmul.mubr.bf16.gmra.mrb[36].mxu0 %v3084_v46  ;;  %1926 = vmatmul.mubr.bf16.gmra.mrb[36].mxu1 %v3084_v46 }
 0x145   : > { %1613 = vmatprep.mubr.bf16.mxu0 %v3085_v47  ;;  %1935 = vmatprep.mubr.bf16.mxu1 %v3085_v47 }
 0x14c   : > { %1614 = vmatmul.mubr.bf16.gmra.mrb[40].mxu0 %v3087_v48  ;;  %1936 = vmatmul.mubr.bf16.gmra.mrb[40].mxu1 %v3087_v48 }
 0x14d   : > { %1623 = vmatprep.mubr.bf16.mxu0 %v3088_v49  ;;  %1945 = vmatprep.mubr.bf16.mxu1 %v3088_v49 }
 0x154   : > { %1624 = vmatmul.mubr.bf16.gmra.mrb[44].mxu0 %v3090_v51  ;;  %1946 = vmatmul.mubr.bf16.gmra.mrb[44].mxu1 %v3090_v51 }
 0x155   : > { %1633 = vmatprep.mubr.bf16.mxu0 %v2437_v52  ;;  %1955 = vmatprep.mubr.bf16.mxu1 %v2437_v52 }
 0x15c   : > { %1634 = vmatmul.mubr.bf16.gmra.mrb[48].mxu0 %v2436_v53  ;;  %1956 = vmatmul.mubr.bf16.gmra.mrb[48].mxu1 %v2436_v53 }
 0x1cf   : > { %v1515_v1 = vpop.f32.mrb[0].mxu0  ;;  %v1837_v2 = vpop.f32.mrb[0].mxu1 }
 0x1d0   : > { %v2573_v3 = vadd.f32 %v1515_v1, %v3647_v61  ;;  %v2623_v4 = vadd.f32 %v1837_v2, %v3649_v62  ;;  %v1517_v5 = vpop.f32.mrb[1].mxu0  ;;  %v1839_v6 = vpop.f32.mrb[1].mxu1 }
 0x1d1   : > { %v2574_v7 = vadd.f32 %v1517_v5, %v3651_v63  ;;  %v2624_v8 = vadd.f32 %v1839_v6, %v3653_v0  ;;  %v1519_v9 = vpop.f32.mrb[2].mxu0  ;;  %v1841_v10 = vpop.f32.mrb[2].mxu1 }
 0x1d2   : > { %1964 = vst [vmem:[%s3659_s30] sm:$0xff] %v2573_v3  ;;  %1966 = vst [vmem:[%s3659_s30 + $0x10] sm:$0xff] %v2623_v4  ;;  %v2575_v11 = vadd.f32 %v1519_v9, %v3647_v61  ;;  %v2625_v12 = vadd.f32 %v1841_v10, %v3649_v62  ;;  %v1521_v13 = vpop.f32.mrb[3].mxu0  ;;  %v1843_v14 = vpop.f32.mrb[3].mxu1 }
 0x1d3   : > { %1965 = vst [vmem:[%s3659_s30 + $0x8] sm:$0xff] %v2574_v7  ;;  %1967 = vst [vmem:[%s3659_s30 + $0x18] sm:$0xff] %v2624_v8  ;;  %v2576_v15 = vadd.f32 %v1521_v13, %v3651_v63  ;;  %v2626_v16 = vadd.f32 %v1843_v14, %v3653_v0 }
 0x1d4   : > { %1968 = vst [vmem:[%s3659_s30 + $0x20] sm:$0xff] %v2575_v11  ;;  %1970 = vst [vmem:[%s3659_s30 + $0x30] sm:$0xff] %v2625_v12 }
 0x1d5   : > { %1969 = vst [vmem:[%s3659_s30 + $0x28] sm:$0xff] %v2576_v15  ;;  %1971 = vst [vmem:[%s3659_s30 + $0x38] sm:$0xff] %v2626_v16 }
 0x1d7   : > { %v1525_v17 = vpop.f32.mrb[4].mxu0  ;;  %v1847_v18 = vpop.f32.mrb[4].mxu1 }
 0x1d8   : > { %v2577_v19 = vadd.f32 %v1525_v17, %v3647_v61  ;;  %v2627_v20 = vadd.f32 %v1847_v18, %v3649_v62  ;;  %v1527_v21 = vpop.f32.mrb[5].mxu0  ;;  %v1849_v22 = vpop.f32.mrb[5].mxu1 }
 0x1d9   : > { %v2578_v23 = vadd.f32 %v1527_v21, %v3651_v63  ;;  %v2628_v24 = vadd.f32 %v1849_v22, %v3653_v0  ;;  %v1529_v25 = vpop.f32.mrb[6].mxu0  ;;  %v1851_v26 = vpop.f32.mrb[6].mxu1 }
 0x1da   : > { %1972 = vst [vmem:[%s3659_s30 + $0x40] sm:$0xff] %v2577_v19  ;;  %1974 = vst [vmem:[%s3659_s30 + $0x50] sm:$0xff] %v2627_v20  ;;  %v2579_v27 = vadd.f32 %v1529_v25, %v3647_v61  ;;  %v2629_v28 = vadd.f32 %v1851_v26, %v3649_v62  ;;  %v1531_v29 = vpop.f32.mrb[7].mxu0  ;;  %v1853_v30 = vpop.f32.mrb[7].mxu1 }
 0x1db   : > { %1973 = vst [vmem:[%s3659_s30 + $0x48] sm:$0xff] %v2578_v23  ;;  %1975 = vst [vmem:[%s3659_s30 + $0x58] sm:$0xff] %v2628_v24  ;;  %v2580_v31 = vadd.f32 %v1531_v29, %v3651_v63  ;;  %v2630_v32 = vadd.f32 %v1853_v30, %v3653_v0 }
 0x1dc   : > { %1976 = vst [vmem:[%s3659_s30 + $0x60] sm:$0xff] %v2579_v27  ;;  %1978 = vst [vmem:[%s3659_s30 + $0x70] sm:$0xff] %v2629_v28 }
 0x1dd   : > { %1977 = vst [vmem:[%s3659_s30 + $0x68] sm:$0xff] %v2580_v31  ;;  %1979 = vst [vmem:[%s3659_s30 + $0x78] sm:$0xff] %v2630_v32 }
 0x1df   : > { %v1535_v33 = vpop.f32.mrb[8].mxu0  ;;  %v1857_v34 = vpop.f32.mrb[8].mxu1 }
 0x1e0   : > { %v2581_v35 = vadd.f32 %v1535_v33, %v3647_v61  ;;  %v2631_v36 = vadd.f32 %v1857_v34, %v3649_v62  ;;  %v1537_v37 = vpop.f32.mrb[9].mxu0  ;;  %v1859_v38 = vpop.f32.mrb[9].mxu1 }
 0x1e1   : > { %v2582_v39 = vadd.f32 %v1537_v37, %v3651_v63  ;;  %v2632_v40 = vadd.f32 %v1859_v38, %v3653_v0  ;;  %v1539_v41 = vpop.f32.mrb[10].mxu0  ;;  %v1861_v42 = vpop.f32.mrb[10].mxu1 }
 0x1e2   : > { %1980 = vst [vmem:[%s3659_s30 + $0x80] sm:$0xff] %v2581_v35  ;;  %1982 = vst [vmem:[%s3659_s30 + $0x90] sm:$0xff] %v2631_v36  ;;  %v2583_v43 = vadd.f32 %v1539_v41, %v3647_v61  ;;  %v2633_v44 = vadd.f32 %v1861_v42, %v3649_v62  ;;  %v1541_v45 = vpop.f32.mrb[11].mxu0  ;;  %v1863_v46 = vpop.f32.mrb[11].mxu1 }
 0x1e3   : > { %1981 = vst [vmem:[%s3659_s30 + $0x88] sm:$0xff] %v2582_v39  ;;  %1983 = vst [vmem:[%s3659_s30 + $0x98] sm:$0xff] %v2632_v40  ;;  %v2584_v47 = vadd.f32 %v1541_v45, %v3651_v63  ;;  %v2634_v48 = vadd.f32 %v1863_v46, %v3653_v0 }
 0x1e4   : > { %1984 = vst [vmem:[%s3659_s30 + $0xa0] sm:$0xff] %v2583_v43  ;;  %1986 = vst [vmem:[%s3659_s30 + $0xb0] sm:$0xff] %v2633_v44 }
 0x1e5   : > { %1985 = vst [vmem:[%s3659_s30 + $0xa8] sm:$0xff] %v2584_v47  ;;  %1987 = vst [vmem:[%s3659_s30 + $0xb8] sm:$0xff] %v2634_v48 }
 0x1e7   : > { %v1545_v49 = vpop.f32.mrb[12].mxu0  ;;  %v1867_v50 = vpop.f32.mrb[12].mxu1 }
 0x1e8   : > { %v2585_v51 = vadd.f32 %v1545_v49, %v3647_v61  ;;  %v2635_v52 = vadd.f32 %v1867_v50, %v3649_v62  ;;  %v1547_v53 = vpop.f32.mrb[13].mxu0  ;;  %v1869_v54 = vpop.f32.mrb[13].mxu1 }
 0x1e9   : > { %v2586_v55 = vadd.f32 %v1547_v53, %v3651_v63  ;;  %v2636_v56 = vadd.f32 %v1869_v54, %v3653_v0  ;;  %v1549_v57 = vpop.f32.mrb[14].mxu0  ;;  %v1871_v58 = vpop.f32.mrb[14].mxu1 }
 0x1ea   : > { %1988 = vst [vmem:[%s3659_s30 + $0xc0] sm:$0xff] %v2585_v51  ;;  %1990 = vst [vmem:[%s3659_s30 + $0xd0] sm:$0xff] %v2635_v52  ;;  %v2587_v59 = vadd.f32 %v1549_v57, %v3647_v61  ;;  %v2637_v60 = vadd.f32 %v1871_v58, %v3649_v62  ;;  %v1551_v1 = vpop.f32.mrb[15].mxu0  ;;  %v1873_v2 = vpop.f32.mrb[15].mxu1 }
 0x1eb   : > { %1989 = vst [vmem:[%s3659_s30 + $0xc8] sm:$0xff] %v2586_v55  ;;  %1991 = vst [vmem:[%s3659_s30 + $0xd8] sm:$0xff] %v2636_v56  ;;  %v2588_v3 = vadd.f32 %v1551_v1, %v3651_v63  ;;  %v2638_v4 = vadd.f32 %v1873_v2, %v3653_v0 }
 0x1ec   : > { %1992 = vst [vmem:[%s3659_s30 + $0xe0] sm:$0xff] %v2587_v59  ;;  %1994 = vst [vmem:[%s3659_s30 + $0xf0] sm:$0xff] %v2637_v60 }
 0x1ed   : > { %1993 = vst [vmem:[%s3659_s30 + $0xe8] sm:$0xff] %v2588_v3  ;;  %1995 = vst [vmem:[%s3659_s30 + $0xf8] sm:$0xff] %v2638_v4 }
 0x1ef   : > { %v1555_v5 = vpop.f32.mrb[16].mxu0  ;;  %v1877_v6 = vpop.f32.mrb[16].mxu1 }
 0x1f0   : > { %v2589_v7 = vadd.f32 %v1555_v5, %v3647_v61  ;;  %v2639_v8 = vadd.f32 %v1877_v6, %v3649_v62  ;;  %v1557_v9 = vpop.f32.mrb[17].mxu0  ;;  %v1879_v10 = vpop.f32.mrb[17].mxu1 }
 0x1f1   : > { %v2590_v11 = vadd.f32 %v1557_v9, %v3651_v63  ;;  %v2640_v12 = vadd.f32 %v1879_v10, %v3653_v0  ;;  %v1559_v13 = vpop.f32.mrb[18].mxu0  ;;  %v1881_v14 = vpop.f32.mrb[18].mxu1 }
 0x1f2   : > { %1996 = vst [vmem:[%s3659_s30 + $0x100] sm:$0xff] %v2589_v7  ;;  %1998 = vst [vmem:[%s3659_s30 + $0x110] sm:$0xff] %v2639_v8  ;;  %v2591_v15 = vadd.f32 %v1559_v13, %v3647_v61  ;;  %v2641_v16 = vadd.f32 %v1881_v14, %v3649_v62  ;;  %v1561_v17 = vpop.f32.mrb[19].mxu0  ;;  %v1883_v18 = vpop.f32.mrb[19].mxu1 }
 0x1f3   : > { %1997 = vst [vmem:[%s3659_s30 + $0x108] sm:$0xff] %v2590_v11  ;;  %1999 = vst [vmem:[%s3659_s30 + $0x118] sm:$0xff] %v2640_v12  ;;  %v2592_v19 = vadd.f32 %v1561_v17, %v3651_v63  ;;  %v2642_v20 = vadd.f32 %v1883_v18, %v3653_v0 }
 0x1f4   : > { %2000 = vst [vmem:[%s3659_s30 + $0x120] sm:$0xff] %v2591_v15  ;;  %2002 = vst [vmem:[%s3659_s30 + $0x130] sm:$0xff] %v2641_v16 }
 0x1f5   : > { %2001 = vst [vmem:[%s3659_s30 + $0x128] sm:$0xff] %v2592_v19  ;;  %2003 = vst [vmem:[%s3659_s30 + $0x138] sm:$0xff] %v2642_v20 }
 0x1f7   : > { %v1565_v21 = vpop.f32.mrb[20].mxu0  ;;  %v1887_v22 = vpop.f32.mrb[20].mxu1 }
 0x1f8   : > { %v2593_v23 = vadd.f32 %v1565_v21, %v3647_v61  ;;  %v2643_v24 = vadd.f32 %v1887_v22, %v3649_v62  ;;  %v1567_v25 = vpop.f32.mrb[21].mxu0  ;;  %v1889_v26 = vpop.f32.mrb[21].mxu1 }
 0x1f9   : > { %v2594_v27 = vadd.f32 %v1567_v25, %v3651_v63  ;;  %v2644_v28 = vadd.f32 %v1889_v26, %v3653_v0  ;;  %v1569_v29 = vpop.f32.mrb[22].mxu0  ;;  %v1891_v30 = vpop.f32.mrb[22].mxu1 }
 0x1fa   : > { %2004 = vst [vmem:[%s3659_s30 + $0x140] sm:$0xff] %v2593_v23  ;;  %2006 = vst [vmem:[%s3659_s30 + $0x150] sm:$0xff] %v2643_v24  ;;  %v2595_v31 = vadd.f32 %v1569_v29, %v3647_v61  ;;  %v2645_v32 = vadd.f32 %v1891_v30, %v3649_v62  ;;  %v1571_v33 = vpop.f32.mrb[23].mxu0  ;;  %v1893_v34 = vpop.f32.mrb[23].mxu1 }
 0x1fb   : > { %2005 = vst [vmem:[%s3659_s30 + $0x148] sm:$0xff] %v2594_v27  ;;  %2007 = vst [vmem:[%s3659_s30 + $0x158] sm:$0xff] %v2644_v28  ;;  %v2596_v35 = vadd.f32 %v1571_v33, %v3651_v63  ;;  %v2646_v36 = vadd.f32 %v1893_v34, %v3653_v0 }
 0x1fc   : > { %2008 = vst [vmem:[%s3659_s30 + $0x160] sm:$0xff] %v2595_v31  ;;  %2010 = vst [vmem:[%s3659_s30 + $0x170] sm:$0xff] %v2645_v32 }
 0x1fd   : > { %2009 = vst [vmem:[%s3659_s30 + $0x168] sm:$0xff] %v2596_v35  ;;  %2011 = vst [vmem:[%s3659_s30 + $0x178] sm:$0xff] %v2646_v36 }
 0x1ff   : > { %v1575_v37 = vpop.f32.mrb[24].mxu0  ;;  %v1897_v38 = vpop.f32.mrb[24].mxu1 }
 0x200   : > { %v2597_v39 = vadd.f32 %v1575_v37, %v3647_v61  ;;  %v2647_v40 = vadd.f32 %v1897_v38, %v3649_v62  ;;  %v1577_v41 = vpop.f32.mrb[25].mxu0  ;;  %v1899_v42 = vpop.f32.mrb[25].mxu1 }
 0x201   : > { %v2598_v43 = vadd.f32 %v1577_v41, %v3651_v63  ;;  %v2648_v44 = vadd.f32 %v1899_v42, %v3653_v0  ;;  %v1579_v45 = vpop.f32.mrb[26].mxu0  ;;  %v1901_v46 = vpop.f32.mrb[26].mxu1 }
 0x202   : > { %2012 = vst [vmem:[%s3659_s30 + $0x180] sm:$0xff] %v2597_v39  ;;  %2014 = vst [vmem:[%s3659_s30 + $0x190] sm:$0xff] %v2647_v40  ;;  %v2599_v47 = vadd.f32 %v1579_v45, %v3647_v61  ;;  %v2649_v48 = vadd.f32 %v1901_v46, %v3649_v62  ;;  %v1581_v49 = vpop.f32.mrb[27].mxu0  ;;  %v1903_v50 = vpop.f32.mrb[27].mxu1 }
 0x203   : > { %2013 = vst [vmem:[%s3659_s30 + $0x188] sm:$0xff] %v2598_v43  ;;  %2015 = vst [vmem:[%s3659_s30 + $0x198] sm:$0xff] %v2648_v44  ;;  %v2600_v51 = vadd.f32 %v1581_v49, %v3651_v63  ;;  %v2650_v52 = vadd.f32 %v1903_v50, %v3653_v0 }
 0x204   : > { %2016 = vst [vmem:[%s3659_s30 + $0x1a0] sm:$0xff] %v2599_v47  ;;  %2018 = vst [vmem:[%s3659_s30 + $0x1b0] sm:$0xff] %v2649_v48 }
 0x205   : > { %2017 = vst [vmem:[%s3659_s30 + $0x1a8] sm:$0xff] %v2600_v51  ;;  %2019 = vst [vmem:[%s3659_s30 + $0x1b8] sm:$0xff] %v2650_v52 }
 0x207   : > { %v1585_v53 = vpop.f32.mrb[28].mxu0  ;;  %v1907_v54 = vpop.f32.mrb[28].mxu1 }
 0x208   : > { %v2601_v55 = vadd.f32 %v1585_v53, %v3647_v61  ;;  %v2651_v56 = vadd.f32 %v1907_v54, %v3649_v62  ;;  %v1587_v57 = vpop.f32.mrb[29].mxu0  ;;  %v1909_v58 = vpop.f32.mrb[29].mxu1 }
 0x209   : > { %v2602_v59 = vadd.f32 %v1587_v57, %v3651_v63  ;;  %v2652_v60 = vadd.f32 %v1909_v58, %v3653_v0  ;;  %v1589_v1 = vpop.f32.mrb[30].mxu0  ;;  %v1911_v2 = vpop.f32.mrb[30].mxu1 }
 0x20a   : > { %2020 = vst [vmem:[%s3659_s30 + $0x1c0] sm:$0xff] %v2601_v55  ;;  %2022 = vst [vmem:[%s3659_s30 + $0x1d0] sm:$0xff] %v2651_v56  ;;  %v2603_v3 = vadd.f32 %v1589_v1, %v3647_v61  ;;  %v2653_v4 = vadd.f32 %v1911_v2, %v3649_v62  ;;  %v1591_v5 = vpop.f32.mrb[31].mxu0  ;;  %v1913_v6 = vpop.f32.mrb[31].mxu1 }
 0x20b   : > { %2021 = vst [vmem:[%s3659_s30 + $0x1c8] sm:$0xff] %v2602_v59  ;;  %2023 = vst [vmem:[%s3659_s30 + $0x1d8] sm:$0xff] %v2652_v60  ;;  %v2604_v7 = vadd.f32 %v1591_v5, %v3651_v63  ;;  %v2654_v8 = vadd.f32 %v1913_v6, %v3653_v0 }
 0x20c   : > { %2024 = vst [vmem:[%s3659_s30 + $0x1e0] sm:$0xff] %v2603_v3  ;;  %2026 = vst [vmem:[%s3659_s30 + $0x1f0] sm:$0xff] %v2653_v4 }
 0x20d   : > { %2025 = vst [vmem:[%s3659_s30 + $0x1e8] sm:$0xff] %v2604_v7  ;;  %2027 = vst [vmem:[%s3659_s30 + $0x1f8] sm:$0xff] %v2654_v8 }
 0x20f   : > { %v1595_v9 = vpop.f32.mrb[32].mxu0  ;;  %v1917_v10 = vpop.f32.mrb[32].mxu1 }
 0x210   : > { %v2605_v11 = vadd.f32 %v1595_v9, %v3647_v61  ;;  %v2655_v12 = vadd.f32 %v1917_v10, %v3649_v62  ;;  %v1597_v13 = vpop.f32.mrb[33].mxu0  ;;  %v1919_v14 = vpop.f32.mrb[33].mxu1 }
 0x211   : > { %v2606_v15 = vadd.f32 %v1597_v13, %v3651_v63  ;;  %v2656_v16 = vadd.f32 %v1919_v14, %v3653_v0  ;;  %v1599_v17 = vpop.f32.mrb[34].mxu0  ;;  %v1921_v18 = vpop.f32.mrb[34].mxu1 }
 0x212   : > { %2028 = vst [vmem:[%s3659_s30 + $0x200] sm:$0xff] %v2605_v11  ;;  %2030 = vst [vmem:[%s3659_s30 + $0x210] sm:$0xff] %v2655_v12  ;;  %v2607_v19 = vadd.f32 %v1599_v17, %v3647_v61  ;;  %v2657_v20 = vadd.f32 %v1921_v18, %v3649_v62  ;;  %v1601_v21 = vpop.f32.mrb[35].mxu0  ;;  %v1923_v22 = vpop.f32.mrb[35].mxu1 }
 0x213   : > { %2029 = vst [vmem:[%s3659_s30 + $0x208] sm:$0xff] %v2606_v15  ;;  %2031 = vst [vmem:[%s3659_s30 + $0x218] sm:$0xff] %v2656_v16  ;;  %v2608_v23 = vadd.f32 %v1601_v21, %v3651_v63  ;;  %v2658_v24 = vadd.f32 %v1923_v22, %v3653_v0 }
 0x214   : > { %2032 = vst [vmem:[%s3659_s30 + $0x220] sm:$0xff] %v2607_v19  ;;  %2034 = vst [vmem:[%s3659_s30 + $0x230] sm:$0xff] %v2657_v20 }
 0x215   : > { %2033 = vst [vmem:[%s3659_s30 + $0x228] sm:$0xff] %v2608_v23  ;;  %2035 = vst [vmem:[%s3659_s30 + $0x238] sm:$0xff] %v2658_v24 }
 0x217   : > { %v1605_v25 = vpop.f32.mrb[36].mxu0  ;;  %v1927_v26 = vpop.f32.mrb[36].mxu1 }
 0x218   : > { %v2609_v27 = vadd.f32 %v1605_v25, %v3647_v61  ;;  %v2659_v28 = vadd.f32 %v1927_v26, %v3649_v62  ;;  %v1607_v29 = vpop.f32.mrb[37].mxu0  ;;  %v1929_v30 = vpop.f32.mrb[37].mxu1  ;;  %v2094_v25 = vld [vmem:[%s3659_s30 + $0x20] sm:$0xff] (%p4090_p10)  ;;  %v2096_v26 = vld [vmem:[%s3659_s30 + $0x28] sm:$0xff] (%p4090_p10) }
 0x219   : > { %v2610_v31 = vadd.f32 %v1607_v29, %v3651_v63  ;;  %v2660_v32 = vadd.f32 %v1929_v30, %v3653_v0  ;;  %v1609_v33 = vpop.f32.mrb[38].mxu0  ;;  %v1931_v34 = vpop.f32.mrb[38].mxu1  ;;  %2095 = vst [vmem:[%s3866_s25 + $0x80] sm:$0xff] (%p4090_p10), %v2094_v25  ;;  %2097 = vst [vmem:[%s3866_s25 + $0x88] sm:$0xff] (%p4090_p10), %v2096_v26  ;;  %v2102_v29 = vld [vmem:[%s3659_s30 + $0x40] sm:$0xff] (%p4090_p10)  ;;  %v2104_v30 = vld [vmem:[%s3659_s30 + $0x48] sm:$0xff] (%p4090_p10) }
 0x21a   : > { %2036 = vst [vmem:[%s3659_s30 + $0x240] sm:$0xff] %v2609_v27  ;;  %2038 = vst [vmem:[%s3659_s30 + $0x250] sm:$0xff] %v2659_v28  ;;  %v2611_v35 = vadd.f32 %v1609_v33, %v3647_v61  ;;  %v2661_v36 = vadd.f32 %v1931_v34, %v3649_v62  ;;  %v1611_v37 = vpop.f32.mrb[39].mxu0  ;;  %v1933_v38 = vpop.f32.mrb[39].mxu1  ;;  %v2098_v27 = vld [vmem:[%s3659_s30 + $0x30] sm:$0xff] (%p4090_p10)  ;;  %v2100_v28 = vld [vmem:[%s3659_s30 + $0x38] sm:$0xff] (%p4090_p10) }
 0x21b   : > { %2037 = vst [vmem:[%s3659_s30 + $0x248] sm:$0xff] %v2610_v31  ;;  %2039 = vst [vmem:[%s3659_s30 + $0x258] sm:$0xff] %v2660_v32  ;;  %v2612_v39 = vadd.f32 %v1611_v37, %v3651_v63  ;;  %v2662_v40 = vadd.f32 %v1933_v38, %v3653_v0  ;;  %v2106_v31 = vld [vmem:[%s3659_s30 + $0x50] sm:$0xff] (%p4090_p10)  ;;  %v2108_v32 = vld [vmem:[%s3659_s30 + $0x58] sm:$0xff] (%p4090_p10) }
 0x21c   : > { %2040 = vst [vmem:[%s3659_s30 + $0x260] sm:$0xff] %v2611_v35  ;;  %2042 = vst [vmem:[%s3659_s30 + $0x270] sm:$0xff] %v2661_v36  ;;  %v2110_v33 = vld [vmem:[%s3659_s30 + $0x60] sm:$0xff] (%p4090_p10)  ;;  %v2112_v34 = vld [vmem:[%s3659_s30 + $0x68] sm:$0xff] (%p4090_p10) }
 0x21d   : > { %2041 = vst [vmem:[%s3659_s30 + $0x268] sm:$0xff] %v2612_v39  ;;  %2043 = vst [vmem:[%s3659_s30 + $0x278] sm:$0xff] %v2662_v40  ;;  %v2114_v35 = vld [vmem:[%s3659_s30 + $0x70] sm:$0xff] (%p4090_p10)  ;;  %v2116_v36 = vld [vmem:[%s3659_s30 + $0x78] sm:$0xff] (%p4090_p10) }
 0x21e   : > { %2099 = vst [vmem:[%s3866_s25 + $0x90] sm:$0xff] (%p4090_p10), %v2098_v27  ;;  %2101 = vst [vmem:[%s3866_s25 + $0x98] sm:$0xff] (%p4090_p10), %v2100_v28  ;;  %v2118_v37 = vld [vmem:[%s3659_s30 + $0x80] sm:$0xff] (%p4090_p10)  ;;  %v2120_v38 = vld [vmem:[%s3659_s30 + $0x88] sm:$0xff] (%p4090_p10) }
 0x21f   : > { %v1615_v41 = vpop.f32.mrb[40].mxu0  ;;  %v1937_v42 = vpop.f32.mrb[40].mxu1  ;;  %2103 = vst [vmem:[%s3866_s25 + $0x100] sm:$0xff] (%p4090_p10), %v2102_v29  ;;  %2105 = vst [vmem:[%s3866_s25 + $0x108] sm:$0xff] (%p4090_p10), %v2104_v30  ;;  %v2122_v39 = vld [vmem:[%s3659_s30 + $0x90] sm:$0xff] (%p4090_p10)  ;;  %v2124_v40 = vld [vmem:[%s3659_s30 + $0x98] sm:$0xff] (%p4090_p10) }
 0x220   : > { %v2613_v43 = vadd.f32 %v1615_v41, %v3647_v61  ;;  %v2663_v44 = vadd.f32 %v1937_v42, %v3649_v62  ;;  %v1617_v45 = vpop.f32.mrb[41].mxu0  ;;  %v1939_v46 = vpop.f32.mrb[41].mxu1  ;;  %2107 = vst [vmem:[%s3866_s25 + $0x110] sm:$0xff] (%p4090_p10), %v2106_v31  ;;  %2109 = vst [vmem:[%s3866_s25 + $0x118] sm:$0xff] (%p4090_p10), %v2108_v32  ;;  %v2126_v41 = vld [vmem:[%s3659_s30 + $0xa0] sm:$0xff] (%p4090_p10)  ;;  %v2128_v42 = vld [vmem:[%s3659_s30 + $0xa8] sm:$0xff] (%p4090_p10) }
 0x221   : > { %v2614_v47 = vadd.f32 %v1617_v45, %v3651_v63  ;;  %v2664_v48 = vadd.f32 %v1939_v46, %v3653_v0  ;;  %v1619_v49 = vpop.f32.mrb[42].mxu0  ;;  %v1941_v50 = vpop.f32.mrb[42].mxu1  ;;  %2111 = vst [vmem:[%s3866_s25 + $0x180] sm:$0xff] (%p4090_p10), %v2110_v33  ;;  %2113 = vst [vmem:[%s3866_s25 + $0x188] sm:$0xff] (%p4090_p10), %v2112_v34  ;;  %v2134_v45 = vld [vmem:[%s3659_s30 + $0xc0] sm:$0xff] (%p4090_p10)  ;;  %v2136_v46 = vld [vmem:[%s3659_s30 + $0xc8] sm:$0xff] (%p4090_p10) }
 0x222   : > { %2044 = vst [vmem:[%s3659_s30 + $0x280] sm:$0xff] %v2613_v43  ;;  %2046 = vst [vmem:[%s3659_s30 + $0x290] sm:$0xff] %v2663_v44  ;;  %v2615_v51 = vadd.f32 %v1619_v49, %v3647_v61  ;;  %v2665_v52 = vadd.f32 %v1941_v50, %v3649_v62  ;;  %v1621_v53 = vpop.f32.mrb[43].mxu0  ;;  %v1943_v54 = vpop.f32.mrb[43].mxu1  ;;  %v2130_v43 = vld [vmem:[%s3659_s30 + $0xb0] sm:$0xff] (%p4090_p10)  ;;  %v2132_v44 = vld [vmem:[%s3659_s30 + $0xb8] sm:$0xff] (%p4090_p10) }
 0x223   : > { %2045 = vst [vmem:[%s3659_s30 + $0x288] sm:$0xff] %v2614_v47  ;;  %2047 = vst [vmem:[%s3659_s30 + $0x298] sm:$0xff] %v2664_v48  ;;  %v2616_v55 = vadd.f32 %v1621_v53, %v3651_v63  ;;  %v2666_v56 = vadd.f32 %v1943_v54, %v3653_v0  ;;  %v2138_v47 = vld [vmem:[%s3659_s30 + $0xd0] sm:$0xff] (%p4090_p10)  ;;  %v2140_v48 = vld [vmem:[%s3659_s30 + $0xd8] sm:$0xff] (%p4090_p10) }
 0x224   : > { %2048 = vst [vmem:[%s3659_s30 + $0x2a0] sm:$0xff] %v2615_v51  ;;  %2050 = vst [vmem:[%s3659_s30 + $0x2b0] sm:$0xff] %v2665_v52  ;;  %v2142_v49 = vld [vmem:[%s3659_s30 + $0xe0] sm:$0xff] (%p4090_p10)  ;;  %v2144_v50 = vld [vmem:[%s3659_s30 + $0xe8] sm:$0xff] (%p4090_p10) }
 0x225   : > { %2049 = vst [vmem:[%s3659_s30 + $0x2a8] sm:$0xff] %v2616_v55  ;;  %2051 = vst [vmem:[%s3659_s30 + $0x2b8] sm:$0xff] %v2666_v56  ;;  %v2146_v51 = vld [vmem:[%s3659_s30 + $0xf0] sm:$0xff] (%p4090_p10)  ;;  %v2148_v52 = vld [vmem:[%s3659_s30 + $0xf8] sm:$0xff] (%p4090_p10) }
 0x226   : > { %2115 = vst [vmem:[%s3866_s25 + $0x190] sm:$0xff] (%p4090_p10), %v2114_v35  ;;  %2117 = vst [vmem:[%s3866_s25 + $0x198] sm:$0xff] (%p4090_p10), %v2116_v36  ;;  %v2150_v53 = vld [vmem:[%s3659_s30 + $0x100] sm:$0xff] (%p4090_p10)  ;;  %v2152_v54 = vld [vmem:[%s3659_s30 + $0x108] sm:$0xff] (%p4090_p10) }
 0x227   : > { %v1625_v57 = vpop.f32.mrb[44].mxu0  ;;  %v1947_v58 = vpop.f32.mrb[44].mxu1  ;;  %2119 = vst [vmem:[%s3866_s25 + $0x200] sm:$0xff] (%p4090_p10), %v2118_v37  ;;  %2121 = vst [vmem:[%s3866_s25 + $0x208] sm:$0xff] (%p4090_p10), %v2120_v38  ;;  %v2154_v55 = vld [vmem:[%s3659_s30 + $0x110] sm:$0xff] (%p4090_p10)  ;;  %v2156_v56 = vld [vmem:[%s3659_s30 + $0x118] sm:$0xff] (%p4090_p10) }
 0x228   : > { %v2617_v59 = vadd.f32 %v1625_v57, %v3647_v61  ;;  %v2667_v60 = vadd.f32 %v1947_v58, %v3649_v62  ;;  %v1627_v1 = vpop.f32.mrb[45].mxu0  ;;  %v1949_v2 = vpop.f32.mrb[45].mxu1  ;;  %2123 = vst [vmem:[%s3866_s25 + $0x210] sm:$0xff] (%p4090_p10), %v2122_v39  ;;  %2125 = vst [vmem:[%s3866_s25 + $0x218] sm:$0xff] (%p4090_p10), %v2124_v40  ;;  %v2158_v57 = vld [vmem:[%s3659_s30 + $0x120] sm:$0xff] (%p4090_p10)  ;;  %v2160_v58 = vld [vmem:[%s3659_s30 + $0x128] sm:$0xff] (%p4090_p10) }
 0x229   : > { %v2618_v3 = vadd.f32 %v1627_v1, %v3651_v63  ;;  %v2668_v4 = vadd.f32 %v1949_v2, %v3653_v0  ;;  %v1629_v5 = vpop.f32.mrb[46].mxu0  ;;  %v1951_v6 = vpop.f32.mrb[46].mxu1  ;;  %2127 = vst [vmem:[%s3866_s25 + $0x280] sm:$0xff] (%p4090_p10), %v2126_v41  ;;  %2129 = vst [vmem:[%s3866_s25 + $0x288] sm:$0xff] (%p4090_p10), %v2128_v42  ;;  %v2166_v1 = vld [vmem:[%s3659_s30 + $0x140] sm:$0xff] (%p4090_p10)  ;;  %v2168_v2 = vld [vmem:[%s3659_s30 + $0x148] sm:$0xff] (%p4090_p10) }
 0x22a   : > { %2052 = vst [vmem:[%s3659_s30 + $0x2c0] sm:$0xff] %v2617_v59  ;;  %2054 = vst [vmem:[%s3659_s30 + $0x2d0] sm:$0xff] %v2667_v60  ;;  %v2619_v7 = vadd.f32 %v1629_v5, %v3647_v61  ;;  %v2669_v8 = vadd.f32 %v1951_v6, %v3649_v62  ;;  %v1631_v9 = vpop.f32.mrb[47].mxu0  ;;  %v1953_v10 = vpop.f32.mrb[47].mxu1  ;;  %v2162_v59 = vld [vmem:[%s3659_s30 + $0x130] sm:$0xff] (%p4090_p10)  ;;  %v2164_v60 = vld [vmem:[%s3659_s30 + $0x138] sm:$0xff] (%p4090_p10) }
 0x22b   : > { %2053 = vst [vmem:[%s3659_s30 + $0x2c8] sm:$0xff] %v2618_v3  ;;  %2055 = vst [vmem:[%s3659_s30 + $0x2d8] sm:$0xff] %v2668_v4  ;;  %v2620_v11 = vadd.f32 %v1631_v9, %v3651_v63  ;;  %v2670_v12 = vadd.f32 %v1953_v10, %v3653_v0  ;;  %v2170_v3 = vld [vmem:[%s3659_s30 + $0x150] sm:$0xff] (%p4090_p10)  ;;  %v2172_v4 = vld [vmem:[%s3659_s30 + $0x158] sm:$0xff] (%p4090_p10) }
 0x22c   : > { %2056 = vst [vmem:[%s3659_s30 + $0x2e0] sm:$0xff] %v2619_v7  ;;  %2058 = vst [vmem:[%s3659_s30 + $0x2f0] sm:$0xff] %v2669_v8  ;;  %v2174_v5 = vld [vmem:[%s3659_s30 + $0x160] sm:$0xff] (%p4090_p10)  ;;  %v2176_v6 = vld [vmem:[%s3659_s30 + $0x168] sm:$0xff] (%p4090_p10) }
 0x22d   : > { %2057 = vst [vmem:[%s3659_s30 + $0x2e8] sm:$0xff] %v2620_v11  ;;  %2059 = vst [vmem:[%s3659_s30 + $0x2f8] sm:$0xff] %v2670_v12  ;;  %2070 = sbr.rel (!%p4090_p10) target bundleno = 601 (0x259), region = 44  ;;  %v2178_v7 = vld [vmem:[%s3659_s30 + $0x170] sm:$0xff] (%p4090_p10)  ;;  %v2180_v8 = vld [vmem:[%s3659_s30 + $0x178] sm:$0xff] (%p4090_p10) }
 0x22e   : > { %2131 = vst [vmem:[%s3866_s25 + $0x290] sm:$0xff] (%p4090_p10), %v2130_v43  ;;  %2133 = vst [vmem:[%s3866_s25 + $0x298] sm:$0xff] (%p4090_p10), %v2132_v44  ;;  %v2182_v9 = vld [vmem:[%s3659_s30 + $0x180] sm:$0xff] (%p4090_p10)  ;;  %v2184_v10 = vld [vmem:[%s3659_s30 + $0x188] sm:$0xff] (%p4090_p10) }
 0x22f   : > { %v1635_v13 = vpop.f32.mrb[48].mxu0  ;;  %v1957_v14 = vpop.f32.mrb[48].mxu1  ;;  %2135 = vst [vmem:[%s3866_s25 + $0x300] sm:$0xff] (%p4090_p10), %v2134_v45  ;;  %2137 = vst [vmem:[%s3866_s25 + $0x308] sm:$0xff] (%p4090_p10), %v2136_v46  ;;  %v2186_v11 = vld [vmem:[%s3659_s30 + $0x190] sm:$0xff] (%p4090_p10)  ;;  %v2188_v12 = vld [vmem:[%s3659_s30 + $0x198] sm:$0xff] (%p4090_p10) }
 0x230   : > { %v2621_v15 = vadd.f32 %v1635_v13, %v3647_v61  ;;  %v2671_v16 = vadd.f32 %v1957_v14, %v3649_v62  ;;  %v1637_v17 = vpop.f32.mrb[49].mxu0  ;;  %v1959_v18 = vpop.f32.mrb[49].mxu1  ;;  %v2086_v61 = vld [vmem:[%s3659_s30] sm:$0xff] (%p4090_p10)  ;;  %v2088_v62 = vld [vmem:[%s3659_s30 + $0x8] sm:$0xff] (%p4090_p10)  ;;  %2139 = vst [vmem:[%s3866_s25 + $0x310] sm:$0xff] (%p4090_p10), %v2138_v47  ;;  %2141 = vst [vmem:[%s3866_s25 + $0x318] sm:$0xff] (%p4090_p10), %v2140_v48 }
 0x231   : > { %v2622_v19 = vadd.f32 %v1637_v17, %v3651_v63  ;;  %v2672_v20 = vadd.f32 %v1959_v18, %v3653_v0  ;;  %v1639_v21 = vpop.f32.mrb[50].mxu0  ;;  %v1961_v22 = vpop.f32.mrb[50].mxu1  ;;  %v2090_v63 = vld [vmem:[%s3659_s30 + $0x10] sm:$0xff] (%p4090_p10)  ;;  %v2092_v0 = vld [vmem:[%s3659_s30 + $0x18] sm:$0xff] (%p4090_p10)  ;;  %2087 = vst [vmem:[%s3866_s25] sm:$0xff] (%p4090_p10), %v2086_v61  ;;  %2089 = vst [vmem:[%s3866_s25 + $0x8] sm:$0xff] (%p4090_p10), %v2088_v62 }
 0x232   : > { %2060 = vst [vmem:[%s3659_s30 + $0x300] sm:$0xf] %v2621_v15  ;;  %2062 = vst [vmem:[%s3659_s30 + $0x310] sm:$0xf] %v2671_v16  ;;  %v1640_v23 = vpop.f32.mrb[51].mxu0  ;;  %v1962_v24 = vpop.f32.mrb[51].mxu1 }
 0x233   : > { %2061 = vst [vmem:[%s3659_s30 + $0x308] sm:$0xf] %v2622_v19  ;;  %2063 = vst [vmem:[%s3659_s30 + $0x318] sm:$0xf] %v2672_v20  ;;  %v2190_v13 = vld [vmem:[%s3659_s30 + $0x1a0] sm:$0xff] (%p4090_p10)  ;;  %v2192_v14 = vld [vmem:[%s3659_s30 + $0x1a8] sm:$0xff] (%p4090_p10) }
 0x234   : > { %2091 = vst [vmem:[%s3866_s25 + $0x10] sm:$0xff] %v2090_v63  ;;  %2093 = vst [vmem:[%s3866_s25 + $0x18] sm:$0xff] %v2092_v0  ;;  %v2194_v15 = vld [vmem:[%s3659_s30 + $0x1b0] sm:$0xff]  ;;  %v2196_v16 = vld [vmem:[%s3659_s30 + $0x1b8] sm:$0xff] }
 0x235   : > { %2143 = vst [vmem:[%s3866_s25 + $0x380] sm:$0xff] %v2142_v49  ;;  %2145 = vst [vmem:[%s3866_s25 + $0x388] sm:$0xff] %v2144_v50  ;;  %v2198_v17 = vld [vmem:[%s3659_s30 + $0x1c0] sm:$0xff]  ;;  %v2200_v18 = vld [vmem:[%s3659_s30 + $0x1c8] sm:$0xff] }
 0x236   : > { %2147 = vst [vmem:[%s3866_s25 + $0x390] sm:$0xff] %v2146_v51  ;;  %2149 = vst [vmem:[%s3866_s25 + $0x398] sm:$0xff] %v2148_v52  ;;  %v2202_v19 = vld [vmem:[%s3659_s30 + $0x1d0] sm:$0xff]  ;;  %v2204_v20 = vld [vmem:[%s3659_s30 + $0x1d8] sm:$0xff] }
 0x237   : > { %2151 = vst [vmem:[%s3866_s25 + $0x400] sm:$0xff] %v2150_v53  ;;  %2153 = vst [vmem:[%s3866_s25 + $0x408] sm:$0xff] %v2152_v54  ;;  %v2206_v21 = vld [vmem:[%s3659_s30 + $0x1e0] sm:$0xff]  ;;  %v2208_v22 = vld [vmem:[%s3659_s30 + $0x1e8] sm:$0xff] }
 0x238   : > { %2155 = vst [vmem:[%s3866_s25 + $0x410] sm:$0xff] %v2154_v55  ;;  %2157 = vst [vmem:[%s3866_s25 + $0x418] sm:$0xff] %v2156_v56  ;;  %v2210_v23 = vld [vmem:[%s3659_s30 + $0x1f0] sm:$0xff]  ;;  %v2212_v24 = vld [vmem:[%s3659_s30 + $0x1f8] sm:$0xff] }
 0x239   : > { %2159 = vst [vmem:[%s3866_s25 + $0x480] sm:$0xff] %v2158_v57  ;;  %2161 = vst [vmem:[%s3866_s25 + $0x488] sm:$0xff] %v2160_v58  ;;  %v2214_v61 = vld [vmem:[%s3659_s30 + $0x200] sm:$0xff]  ;;  %v2216_v62 = vld [vmem:[%s3659_s30 + $0x208] sm:$0xff] }
 0x23a   : > { %2163 = vst [vmem:[%s3866_s25 + $0x490] sm:$0xff] %v2162_v59  ;;  %2165 = vst [vmem:[%s3866_s25 + $0x498] sm:$0xff] %v2164_v60  ;;  %v2218_v63 = vld [vmem:[%s3659_s30 + $0x210] sm:$0xff]  ;;  %v2220_v0 = vld [vmem:[%s3659_s30 + $0x218] sm:$0xff] }
 0x23b   : > { %2167 = vst [vmem:[%s3866_s25 + $0x500] sm:$0xff] %v2166_v1  ;;  %2169 = vst [vmem:[%s3866_s25 + $0x508] sm:$0xff] %v2168_v2  ;;  %v2222_v25 = vld [vmem:[%s3659_s30 + $0x220] sm:$0xff]  ;;  %v2224_v26 = vld [vmem:[%s3659_s30 + $0x228] sm:$0xff] }
 0x23c   : > { %2171 = vst [vmem:[%s3866_s25 + $0x510] sm:$0xff] %v2170_v3  ;;  %2173 = vst [vmem:[%s3866_s25 + $0x518] sm:$0xff] %v2172_v4  ;;  %v2226_v27 = vld [vmem:[%s3659_s30 + $0x230] sm:$0xff]  ;;  %v2228_v28 = vld [vmem:[%s3659_s30 + $0x238] sm:$0xff] }
 0x23d   : > { %2175 = vst [vmem:[%s3866_s25 + $0x580] sm:$0xff] %v2174_v5  ;;  %2177 = vst [vmem:[%s3866_s25 + $0x588] sm:$0xff] %v2176_v6  ;;  %v2230_v29 = vld [vmem:[%s3659_s30 + $0x240] sm:$0xff]  ;;  %v2232_v30 = vld [vmem:[%s3659_s30 + $0x248] sm:$0xff] }
 0x23e   : > { %2179 = vst [vmem:[%s3866_s25 + $0x590] sm:$0xff] %v2178_v7  ;;  %2181 = vst [vmem:[%s3866_s25 + $0x598] sm:$0xff] %v2180_v8  ;;  %v2234_v31 = vld [vmem:[%s3659_s30 + $0x250] sm:$0xff]  ;;  %v2236_v32 = vld [vmem:[%s3659_s30 + $0x258] sm:$0xff] }
 0x23f   : > { %2183 = vst [vmem:[%s3866_s25 + $0x600] sm:$0xff] %v2182_v9  ;;  %2185 = vst [vmem:[%s3866_s25 + $0x608] sm:$0xff] %v2184_v10  ;;  %v2238_v33 = vld [vmem:[%s3659_s30 + $0x260] sm:$0xff]  ;;  %v2240_v34 = vld [vmem:[%s3659_s30 + $0x268] sm:$0xff] }
 0x240   : > { %2187 = vst [vmem:[%s3866_s25 + $0x610] sm:$0xff] %v2186_v11  ;;  %2189 = vst [vmem:[%s3866_s25 + $0x618] sm:$0xff] %v2188_v12  ;;  %v2242_v35 = vld [vmem:[%s3659_s30 + $0x270] sm:$0xff]  ;;  %v2244_v36 = vld [vmem:[%s3659_s30 + $0x278] sm:$0xff] }
 0x241   : > { %2191 = vst [vmem:[%s3866_s25 + $0x680] sm:$0xff] %v2190_v13  ;;  %2193 = vst [vmem:[%s3866_s25 + $0x688] sm:$0xff] %v2192_v14  ;;  %v2246_v37 = vld [vmem:[%s3659_s30 + $0x280] sm:$0xff]  ;;  %v2248_v38 = vld [vmem:[%s3659_s30 + $0x288] sm:$0xff] }
 0x242   : > { %2195 = vst [vmem:[%s3866_s25 + $0x690] sm:$0xff] %v2194_v15  ;;  %2197 = vst [vmem:[%s3866_s25 + $0x698] sm:$0xff] %v2196_v16  ;;  %v2250_v39 = vld [vmem:[%s3659_s30 + $0x290] sm:$0xff]  ;;  %v2252_v40 = vld [vmem:[%s3659_s30 + $0x298] sm:$0xff] }
 0x243   : > { %2199 = vst [vmem:[%s3866_s25 + $0x700] sm:$0xff] %v2198_v17  ;;  %2201 = vst [vmem:[%s3866_s25 + $0x708] sm:$0xff] %v2200_v18  ;;  %v2254_v41 = vld [vmem:[%s3659_s30 + $0x2a0] sm:$0xff]  ;;  %v2256_v42 = vld [vmem:[%s3659_s30 + $0x2a8] sm:$0xff] }
 0x244   : > { %2203 = vst [vmem:[%s3866_s25 + $0x710] sm:$0xff] %v2202_v19  ;;  %2205 = vst [vmem:[%s3866_s25 + $0x718] sm:$0xff] %v2204_v20  ;;  %v2258_v43 = vld [vmem:[%s3659_s30 + $0x2b0] sm:$0xff]  ;;  %v2260_v44 = vld [vmem:[%s3659_s30 + $0x2b8] sm:$0xff] }
 0x245   : > { %2207 = vst [vmem:[%s3866_s25 + $0x780] sm:$0xff] %v2206_v21  ;;  %2209 = vst [vmem:[%s3866_s25 + $0x788] sm:$0xff] %v2208_v22  ;;  %v2262_v45 = vld [vmem:[%s3659_s30 + $0x2c0] sm:$0xff]  ;;  %v2264_v46 = vld [vmem:[%s3659_s30 + $0x2c8] sm:$0xff] }
 0x246   : > { %2211 = vst [vmem:[%s3866_s25 + $0x790] sm:$0xff] %v2210_v23  ;;  %2213 = vst [vmem:[%s3866_s25 + $0x798] sm:$0xff] %v2212_v24  ;;  %v2266_v47 = vld [vmem:[%s3659_s30 + $0x2d0] sm:$0xff]  ;;  %v2268_v48 = vld [vmem:[%s3659_s30 + $0x2d8] sm:$0xff] }
 0x247   : > { %2215 = vst [vmem:[%s3866_s25 + $0x800] sm:$0xff] %v2214_v61  ;;  %2217 = vst [vmem:[%s3866_s25 + $0x808] sm:$0xff] %v2216_v62  ;;  %v2270_v49 = vld [vmem:[%s3659_s30 + $0x2e0] sm:$0xff]  ;;  %v2272_v50 = vld [vmem:[%s3659_s30 + $0x2e8] sm:$0xff] }
 0x248   : > { %2219 = vst [vmem:[%s3866_s25 + $0x810] sm:$0xff] %v2218_v63  ;;  %2221 = vst [vmem:[%s3866_s25 + $0x818] sm:$0xff] %v2220_v0  ;;  %v2274_v51 = vld [vmem:[%s3659_s30 + $0x2f0] sm:$0xff]  ;;  %v2276_v52 = vld [vmem:[%s3659_s30 + $0x2f8] sm:$0xff] }
 0x249   : > { %2223 = vst [vmem:[%s3866_s25 + $0x880] sm:$0xff] %v2222_v25  ;;  %2225 = vst [vmem:[%s3866_s25 + $0x888] sm:$0xff] %v2224_v26  ;;  %v2278_v53 = vld [vmem:[%s3659_s30 + $0x300] sm:$0xff]  ;;  %v2280_v54 = vld [vmem:[%s3659_s30 + $0x308] sm:$0xff] }
 0x24a   : > { %2227 = vst [vmem:[%s3866_s25 + $0x890] sm:$0xff] %v2226_v27  ;;  %2229 = vst [vmem:[%s3866_s25 + $0x898] sm:$0xff] %v2228_v28  ;;  %v2282_v55 = vld [vmem:[%s3659_s30 + $0x310] sm:$0xff]  ;;  %v2284_v56 = vld [vmem:[%s3659_s30 + $0x318] sm:$0xff] }
 0x24b   : > { %2231 = vst [vmem:[%s3866_s25 + $0x900] sm:$0xff] %v2230_v29  ;;  %2233 = vst [vmem:[%s3866_s25 + $0x908] sm:$0xff] %v2232_v30 }
 0x24c   : > { %2235 = vst [vmem:[%s3866_s25 + $0x910] sm:$0xff] %v2234_v31  ;;  %2237 = vst [vmem:[%s3866_s25 + $0x918] sm:$0xff] %v2236_v32 }
 0x24d   : > { %2239 = vst [vmem:[%s3866_s25 + $0x980] sm:$0xff] %v2238_v33  ;;  %2241 = vst [vmem:[%s3866_s25 + $0x988] sm:$0xff] %v2240_v34 }
 0x24e   : > { %2243 = vst [vmem:[%s3866_s25 + $0x990] sm:$0xff] %v2242_v35  ;;  %2245 = vst [vmem:[%s3866_s25 + $0x998] sm:$0xff] %v2244_v36 }
 0x24f   : > { %2247 = vst [vmem:[%s3866_s25 + $0xa00] sm:$0xff] %v2246_v37  ;;  %2249 = vst [vmem:[%s3866_s25 + $0xa08] sm:$0xff] %v2248_v38 }
 0x250   : > { %2251 = vst [vmem:[%s3866_s25 + $0xa10] sm:$0xff] %v2250_v39  ;;  %2253 = vst [vmem:[%s3866_s25 + $0xa18] sm:$0xff] %v2252_v40 }
 0x251   : > { %2255 = vst [vmem:[%s3866_s25 + $0xa80] sm:$0xff] %v2254_v41  ;;  %2257 = vst [vmem:[%s3866_s25 + $0xa88] sm:$0xff] %v2256_v42 }
 0x252   : > { %2259 = vst [vmem:[%s3866_s25 + $0xa90] sm:$0xff] %v2258_v43  ;;  %2261 = vst [vmem:[%s3866_s25 + $0xa98] sm:$0xff] %v2260_v44 }
 0x253   : > { %2263 = vst [vmem:[%s3866_s25 + $0xb00] sm:$0xff] %v2262_v45  ;;  %2265 = vst [vmem:[%s3866_s25 + $0xb08] sm:$0xff] %v2264_v46 }
 0x254   : > { %2267 = vst [vmem:[%s3866_s25 + $0xb10] sm:$0xff] %v2266_v47  ;;  %2269 = vst [vmem:[%s3866_s25 + $0xb18] sm:$0xff] %v2268_v48 }
 0x255   : > { %2271 = vst [vmem:[%s3866_s25 + $0xb80] sm:$0xff] %v2270_v49  ;;  %2273 = vst [vmem:[%s3866_s25 + $0xb88] sm:$0xff] %v2272_v50 }
 0x256   : > { %2275 = vst [vmem:[%s3866_s25 + $0xb90] sm:$0xff] %v2274_v51  ;;  %2277 = vst [vmem:[%s3866_s25 + $0xb98] sm:$0xff] %v2276_v52 }
 0x257   : > { %2279 = vst [vmem:[%s3866_s25 + $0xc00] sm:$0xff] %v2278_v53  ;;  %2281 = vst [vmem:[%s3866_s25 + $0xc08] sm:$0xff] %v2280_v54 }
 0x258   : > { %2283 = vst [vmem:[%s3866_s25 + $0xc10] sm:$0xff] %v2282_v55  ;;  %2285 = vst [vmem:[%s3866_s25 + $0xc18] sm:$0xff] %v2284_v56 }
 0x259 PF: > { %p16_p12 = scmp.ge.s32.totalorder %s3240_s17, 6   ;;  %s4091_s12 = smov %s3183_s13 }
 0x25a   : > { %s4092_s13 = smov %s3187_s14  ;;  %s4093_s14 = smov %s3250_s20 }
 0x25b   : > { %s4094_s15 = smov %s3240_s17  ;;  %18 = sbr.rel (!%p16_p12) target bundleno = 5 (0x5), region = 108 }
 0x262   :  { %2301 = vsyncpa [#allocation3], 1 }
 0x263   :  { %2303 = vsyncpa [#allocation3 + $0x1], 1 }
 0x264   :  { %2304 = vsyncpa [#allocation5], 1 }
 0x265   :  { %2306 = vsyncpa [#allocation5 + $0x1], 1 }

</bundles_post_ra>
